<compile_context>
chip_gen: v7x
topology: tpu7x:2x2x1
jax: 0.10.0
libtpu: 0.0.40
codegen_flags: <defaults>
</compile_context>

<pallas_src>
import jax
import jax.numpy as jnp
from jax.experimental import pallas as pl
from jax.experimental.pallas import tpu as pltpu


def mlp_kernel(x_ref, w1_ref, b1_ref, w2_ref, b2_ref, w3_ref, b3_ref, o_ref):
    # layer1 + relu (bf16 inputs, f32 accumulate, f32 bias)
    h1 = jnp.dot(x_ref[...], w1_ref[...], preferred_element_type=jnp.float32) + b1_ref[...]
    h1 = jnp.maximum(h1, 0.0).astype(jnp.bfloat16)
    # layer2 + relu
    h2 = jnp.dot(h1, w2_ref[...], preferred_element_type=jnp.float32) + b2_ref[...]
    h2 = jnp.maximum(h2, 0.0).astype(jnp.bfloat16)
    # layer3 (no activation)
    o_ref[...] = (jnp.dot(h2, w3_ref[...], preferred_element_type=jnp.float32)
                  + b3_ref[...]).astype(o_ref.dtype)


def _round_up(n, m):
    return ((n + m - 1) // m) * m


def _pad_to(arr, target_shape):
    pads = [(0, t - s) for s, t in zip(arr.shape, target_shape)]
    return jnp.pad(arr, pads)


def prepare_params(w1, b1, w2, b2, w3, b3):
    """One-time weight prep: cast to bf16 (MXU-native) and pad feature dims to 128 lanes.
    Call this once at init; per-forward we only touch the activation."""
    d_in, d_h1 = w1.shape
    d_h2, d_out = w2.shape[1], w3.shape[1]
    p_in, p_h1, p_h2, p_out = (_round_up(d, 128) for d in (d_in, d_h1, d_h2, d_out))
    params = dict(
        w1=_pad_to(w1.astype(jnp.bfloat16), (p_in, p_h1)),
        b1=_pad_to(b1.astype(jnp.float32), (1, p_h1)),
        w2=_pad_to(w2.astype(jnp.bfloat16), (p_h1, p_h2)),
        b2=_pad_to(b2.astype(jnp.float32), (1, p_h2)),
        w3=_pad_to(w3.astype(jnp.bfloat16), (p_h2, p_out)),
        b3=_pad_to(b3.astype(jnp.float32), (1, p_out)),
    )
    dims = (int(d_in), int(d_h1), int(d_h2), int(d_out))
    return params, dims


def neural_net_forward(x, params, dims, *, block_m=512):
    """x: (B, input_num) f32; params: output of prepare_params. Returns (B, out_put) f32."""
    d_in, d_h1, d_h2, d_out = dims
    w1p, b1p = params["w1"], params["b1"]
    w2p, b2p = params["w2"], params["b2"]
    w3p, b3p = params["w3"], params["b3"]
    p_in, p_h1 = w1p.shape
    p_h2, p_out = w3p.shape

    B = x.shape[0]
    assert x.shape[1] == d_in

    # Batch tiling: sublane-aligned tile, at most block_m rows per grid step.
    tm = min(block_m, _round_up(B, 8))
    # Keep >= 2 grid steps when the batch is large enough, so the "parallel"
    # batch axis can be sharded across v7x's two TensorCores.
    if _round_up(B, 8) >= 2 * 128:
        tm = min(tm, _round_up(pl.cdiv(B, 2), 8))
    pB = _round_up(B, tm)

    # Per-call activation prep only (single fused cast+pad; weights are pre-converted).
    xp = _pad_to(x.astype(jnp.bfloat16), (pB, p_in))

    def resident(shape):
        # Constant index_map -> DMA'd once; single-buffered (no wasted second buffer).
        return pl.BlockSpec(shape, lambda i: (0, 0), pipeline_mode=pl.Buffered(1))

    flops = 2 * pB * (p_in * p_h1 + p_h1 * p_h2 + p_h2 * p_out)
    bytes_accessed = (
        pB * p_in * 2                                        # x (bf16)
        + (p_in * p_h1 + p_h1 * p_h2 + p_h2 * p_out) * 2     # weights (bf16)
        + (p_h1 + p_h2 + p_out) * 4                          # biases (f32)
        + pB * p_out * 4                                     # output (f32)
    )

    out = pl.pallas_call(
        mlp_kernel,
        out_shape=jax.ShapeDtypeStruct((pB, p_out), jnp.float32),
        grid=(pB // tm,),
        in_specs=[
            pl.BlockSpec((tm, p_in), lambda i: (i, 0)),
            resident((p_in, p_h1)), resident((1, p_h1)),
            resident((p_h1, p_h2)), resident((1, p_h2)),
            resident((p_h2, p_out)), resident((1, p_out)),
        ],
        out_specs=pl.BlockSpec((tm, p_out), lambda i: (i, 0)),
        compiler_params=pltpu.CompilerParams(
            dimension_semantics=("parallel",),
        ),
        cost_estimate=pl.CostEstimate(
            flops=flops, transcendentals=0, bytes_accessed=bytes_accessed),
    )(xp, w1p, b1p, w2p, b2p, w3p, b3p)
    return out[:B, :d_out]


def init_linear(key, in_features, out_features):
    """Deterministic init mimicking torch.nn.Linear default (uniform +-1/sqrt(in)).
    Returns W as (in, out) (already transposed for x @ W) and b as (1, out)."""
    kw, kb = jax.random.split(key)
    bound = 1.0 / jnp.sqrt(jnp.float32(in_features))
    w = jax.random.uniform(kw, (in_features, out_features), jnp.float32, -bound, bound)
    b = jax.random.uniform(kb, (1, out_features), jnp.float32, -bound, bound)
    return w, b


def ref_forward_bf16(x, w1, b1, w2, b2, w3, b3):
    # Plain-JAX reference with the same bf16-input / f32-accumulate numerics as the kernel.
    xb = x.astype(jnp.bfloat16)
    h1 = jnp.maximum(
        jnp.dot(xb, w1.astype(jnp.bfloat16), preferred_element_type=jnp.float32) + b1, 0.0)
    h2 = jnp.maximum(
        jnp.dot(h1.astype(jnp.bfloat16), w2.astype(jnp.bfloat16),
                preferred_element_type=jnp.float32) + b2, 0.0)
    return jnp.dot(h2.astype(jnp.bfloat16), w3.astype(jnp.bfloat16),
                   preferred_element_type=jnp.float32) + b3


def ref_forward_f32(x, w1, b1, w2, b2, w3, b3):
    h1 = jnp.maximum(x @ w1 + b1, 0.0)
    h2 = jnp.maximum(h1 @ w2 + b2, 0.0)
    return h2 @ w3 + b3


if __name__ == "__main__":
    # Shapes consistent with the MLP: input_num=784 (28x28), hidden1=500, hidden2=200, out=10.
    input_num, hidden1_size, hidden2_size, out_put = 784, 500, 200, 10
    batch = 8

    key = jax.random.PRNGKey(0)
    kx, k1, k2, k3 = jax.random.split(key, 4)

    x = jax.random.normal(kx, (batch, input_num), jnp.float32)
    w1, b1 = init_linear(k1, input_num, hidden1_size)
    w2, b2 = init_linear(k2, hidden1_size, hidden2_size)
    w3, b3 = init_linear(k3, hidden2_size, out_put)

    # One-time weight cast+pad, hoisted out of the per-call path.
    params, dims = prepare_params(w1, b1, w2, b2, w3, b3)
    fwd = jax.jit(neural_net_forward, static_argnums=(2,))

    out = jax.block_until_ready(fwd(x, params, dims))
    assert out.shape == (batch, out_put)

    ref_bf16 = ref_forward_bf16(x, w1, b1, w2, b2, w3, b3)
    ref_f32 = ref_forward_f32(x, w1, b1, w2, b2, w3, b3)
    # bf16 MXU inputs deviate slightly from the f32 PyTorch reference (inference-grade).
    assert jnp.allclose(out, ref_bf16, atol=1e-2, rtol=1e-2)
    assert jnp.allclose(out, ref_f32, atol=5e-2, rtol=5e-2)

    # Exercise the multi-step batch grid path: B=600 -> tm=304, pB=608, grid=(2,).
    batch2 = 600
    x2 = jax.random.normal(jax.random.PRNGKey(1), (batch2, input_num), jnp.float32)
    out2 = jax.block_until_ready(fwd(x2, params, dims))
    assert out2.shape == (batch2, out_put)
    assert jnp.allclose(out2, ref_forward_bf16(x2, w1, b1, w2, b2, w3, b3),
                        atol=1e-2, rtol=1e-2)

    print("KERNEL_OK")
</pallas_src>

<mosaic_0001>
module attributes {stable_mosaic.version = 11 : i64} {
  func.func @mlp_kernel(%arg0: i32, %arg1: memref<8x896xbf16, #tpu.memory_space<vmem>>, %arg2: memref<896x512xbf16, #tpu.memory_space<vmem>>, %arg3: memref<1x512xf32, #tpu.memory_space<vmem>>, %arg4: memref<512x256xbf16, #tpu.memory_space<vmem>>, %arg5: memref<1x256xf32, #tpu.memory_space<vmem>>, %arg6: memref<256x128xbf16, #tpu.memory_space<vmem>>, %arg7: memref<1x128xf32, #tpu.memory_space<vmem>>, %arg8: memref<8x128xf32, #tpu.memory_space<vmem>>) attributes {dimension_semantics = [#tpu.dimension_semantics<parallel>], iteration_bounds = array<i64: 1>, scalar_prefetch = 0 : i64, scratch_operands = 0 : i64, tpu.core_type = #tpu.core_type<tc>, window_params = [{transform_indices = @transform_0, window_bounds = array<i64: 8, 896>}, {pipeline_mode = #tpu.pipeline_mode<synchronous>, transform_indices = @transform_1, window_bounds = array<i64: 896, 512>}, {pipeline_mode = #tpu.pipeline_mode<synchronous>, transform_indices = @transform_2, window_bounds = array<i64: 1, 512>}, {pipeline_mode = #tpu.pipeline_mode<synchronous>, transform_indices = @transform_3, window_bounds = array<i64: 512, 256>}, {pipeline_mode = #tpu.pipeline_mode<synchronous>, transform_indices = @transform_4, window_bounds = array<i64: 1, 256>}, {pipeline_mode = #tpu.pipeline_mode<synchronous>, transform_indices = @transform_5, window_bounds = array<i64: 256, 128>}, {pipeline_mode = #tpu.pipeline_mode<synchronous>, transform_indices = @transform_6, window_bounds = array<i64: 1, 128>}, {transform_indices = @transform_7, window_bounds = array<i64: 8, 128>}]} {
    %c0 = arith.constant 0 : index
    %c0_0 = arith.constant 0 : index
    %0 = vector.load %arg1[%c0, %c0_0] : memref<8x896xbf16, #tpu.memory_space<vmem>>, vector<8x896xbf16>
    %c0_1 = arith.constant 0 : index
    %c0_2 = arith.constant 0 : index
    %1 = vector.load %arg2[%c0_1, %c0_2] : memref<896x512xbf16, #tpu.memory_space<vmem>>, vector<896x512xbf16>
    %cst = arith.constant dense<0.000000e+00> : vector<8x512xf32>
    %2 = tpu.matmul %0, %1, %cst {dimension_numbers = #tpu.dot_dimension_numbers<[1], [0], [0], [1], [0, 0, 1, 1], [], []>} : vector<8x896xbf16>, vector<896x512xbf16>, vector<8x512xf32> -> vector<8x512xf32>
    %c0_3 = arith.constant 0 : index
    %c0_4 = arith.constant 0 : index
    %3 = vector.load %arg3[%c0_3, %c0_4] : memref<1x512xf32, #tpu.memory_space<vmem>>, vector<1x512xf32>
    %4 = vector.broadcast %3 : vector<1x512xf32> to vector<8x512xf32>
    %5 = arith.addf %2, %4 : vector<8x512xf32>
    %cst_5 = arith.constant 0.000000e+00 : f32
    %6 = vector.broadcast %cst_5 : f32 to vector<8x512xf32>
    %7 = arith.maximumf %5, %6 : vector<8x512xf32>
    %8 = arith.truncf %7 : vector<8x512xf32> to vector<8x512xbf16>
    %c0_6 = arith.constant 0 : index
    %c0_7 = arith.constant 0 : index
    %9 = vector.load %arg4[%c0_6, %c0_7] : memref<512x256xbf16, #tpu.memory_space<vmem>>, vector<512x256xbf16>
    %cst_8 = arith.constant dense<0.000000e+00> : vector<8x256xf32>
    %10 = tpu.matmul %8, %9, %cst_8 {dimension_numbers = #tpu.dot_dimension_numbers<[1], [0], [0], [1], [0, 0, 1, 1], [], []>} : vector<8x512xbf16>, vector<512x256xbf16>, vector<8x256xf32> -> vector<8x256xf32>
    %c0_9 = arith.constant 0 : index
    %c0_10 = arith.constant 0 : index
    %11 = vector.load %arg5[%c0_9, %c0_10] : memref<1x256xf32, #tpu.memory_space<vmem>>, vector<1x256xf32>
    %12 = vector.broadcast %11 : vector<1x256xf32> to vector<8x256xf32>
    %13 = arith.addf %10, %12 : vector<8x256xf32>
    %cst_11 = arith.constant 0.000000e+00 : f32
    %14 = vector.broadcast %cst_11 : f32 to vector<8x256xf32>
    %15 = arith.maximumf %13, %14 : vector<8x256xf32>
    %16 = arith.truncf %15 : vector<8x256xf32> to vector<8x256xbf16>
    %c0_12 = arith.constant 0 : index
    %c0_13 = arith.constant 0 : index
    %17 = vector.load %arg6[%c0_12, %c0_13] : memref<256x128xbf16, #tpu.memory_space<vmem>>, vector<256x128xbf16>
    %cst_14 = arith.constant dense<0.000000e+00> : vector<8x128xf32>
    %18 = tpu.matmul %16, %17, %cst_14 {dimension_numbers = #tpu.dot_dimension_numbers<[1], [0], [0], [1], [0, 0, 1, 1], [], []>} : vector<8x256xbf16>, vector<256x128xbf16>, vector<8x128xf32> -> vector<8x128xf32>
    %c0_15 = arith.constant 0 : index
    %c0_16 = arith.constant 0 : index
    %19 = vector.load %arg7[%c0_15, %c0_16] : memref<1x128xf32, #tpu.memory_space<vmem>>, vector<1x128xf32>
    %20 = vector.broadcast %19 : vector<1x128xf32> to vector<8x128xf32>
    %21 = arith.addf %18, %20 : vector<8x128xf32>
    %c0_17 = arith.constant 0 : index
    %c0_18 = arith.constant 0 : index
    %22 = vector.load %arg8[%c0_17, %c0_18] : memref<8x128xf32, #tpu.memory_space<vmem>>, vector<8x128xf32>
    tpu.vector_store %arg8[%c0_17, %c0_18], %21 {strides = array<i32>} : memref<8x128xf32, #tpu.memory_space<vmem>>, vector<8x128xf32>,
    return
  }
  func.func @transform_0(%arg0: i32) -> (i32, i32) {
    %c0_i32 = arith.constant 0 : i32
    %c0_i32_0 = arith.constant 0 : i32
    return %arg0, %c0_i32 : i32, i32
  }
  func.func @transform_1(%arg0: i32) -> (i32, i32) {
    %c0_i32 = arith.constant 0 : i32
    %c0_i32_0 = arith.constant 0 : i32
    %c0_i32_1 = arith.constant 0 : i32
    return %c0_i32, %c0_i32_0 : i32, i32
  }
  func.func @transform_2(%arg0: i32) -> (i32, i32) {
    %c0_i32 = arith.constant 0 : i32
    %c0_i32_0 = arith.constant 0 : i32
    %c0_i32_1 = arith.constant 0 : i32
    return %c0_i32, %c0_i32_0 : i32, i32
  }
  func.func @transform_3(%arg0: i32) -> (i32, i32) {
    %c0_i32 = arith.constant 0 : i32
    %c0_i32_0 = arith.constant 0 : i32
    %c0_i32_1 = arith.constant 0 : i32
    return %c0_i32, %c0_i32_0 : i32, i32
  }
  func.func @transform_4(%arg0: i32) -> (i32, i32) {
    %c0_i32 = arith.constant 0 : i32
    %c0_i32_0 = arith.constant 0 : i32
    %c0_i32_1 = arith.constant 0 : i32
    return %c0_i32, %c0_i32_0 : i32, i32
  }
  func.func @transform_5(%arg0: i32) -> (i32, i32) {
    %c0_i32 = arith.constant 0 : i32
    %c0_i32_0 = arith.constant 0 : i32
    %c0_i32_1 = arith.constant 0 : i32
    return %c0_i32, %c0_i32_0 : i32, i32
  }
  func.func @transform_6(%arg0: i32) -> (i32, i32) {
    %c0_i32 = arith.constant 0 : i32
    %c0_i32_0 = arith.constant 0 : i32
    %c0_i32_1 = arith.constant 0 : i32
    return %c0_i32, %c0_i32_0 : i32, i32
  }
  func.func @transform_7(%arg0: i32) -> (i32, i32) {
    %c0_i32 = arith.constant 0 : i32
    %c0_i32_0 = arith.constant 0 : i32
    return %arg0, %c0_i32 : i32, i32
  }
}

</mosaic_0001>

<bundles_post_ra>
// kernel: neural_net_forward.1
= control target key start
LH: loop header
LB: loop body
LE: loop exit
PB: predicated region body
PF: predicated region fallthrough
CT: control target
= control target key end

     0   :  { %12 = vsyncpa [#allocation3], 0  ;;  %s3571_s0 = inlined_call_operand.vmem [shape: bf16[8,896], index: 0, kind: input, shape index: {}]   ;;  %s3572_s1 = inlined_call_operand.hbm [shape: bf16[896,512], index: 1, kind: input, shape index: {}]   ;;  %s3573_s2 = inlined_call_operand.vmem [shape: f32[1,512], index: 2, kind: input, shape index: {}]   ;;  %s3574_s3 = inlined_call_operand.hbm [shape: bf16[512,256], index: 3, kind: input, shape index: {}]   ;;  %s3575_s4 = inlined_call_operand.vmem [shape: f32[1,256], index: 4, kind: input, shape index: {}]   ;;  %s3576_s5 = inlined_call_operand.vmem [shape: bf16[256,128], index: 5, kind: input, shape index: {}]   ;;  %s3577_s6 = inlined_call_operand.vmem [shape: f32[1,128], index: 6, kind: input, shape index: {}]   ;;  %s3578_s7 = inlined_call_operand.hbm [shape: f32[8,128], index: 7, kind: output, shape index: {}]  }
   0x1   :  { %13 = vsyncpa [#allocation6], 0 }
   0x2   :  { %14 = vsyncpa [#allocation4], 0  ;;  %s3362_s24 = smov [#allocation2]   ;;  %s3290_s28 = scalar_lea.hbm %s3572_s1, 28672 }
   0x3   :  { %s22_s25 = sshll.u32 %s3362_s24, 4  ;;  %p3291_p0 = scmp.ne.s32.totalorder %s3572_s1, %s3290_s28  ;;  %s23_s25 = int_to_ptr.vmem [resolvable:$true] %s22_s25 }
   0x4   :  { %p3294_p1 = scmp.lt.u32.totalorder %s3290_s28, %s3572_s1 }
   0x6   :  { %p3296_p2 = pnand %p3294_p1, %p3291_p0 }
   0x8   :  { %3299 = shalt.err (!%p3296_p2)
}
   0x9   :  { %s3300_s10 = scalar_lea.vmem %s23_s25, 28672  ;;  %p3305_p4 = scmp.lt.s32.totalorder %s23_s25, %s23_s25 }
   0xa   :  { %p3301_p3 = scmp.ne.s32.totalorder %s23_s25, %s3300_s10  ;;  %p3306_p5 = scmp.lt.s32.totalorder %s3300_s10, %s3300_s10 }
   0xc   :  { %p3307_p6 = por %p3306_p5, %p3305_p4 }
   0xe   :  { %p3308_p7 = pnand %p3307_p6, %p3301_p3 }
  0x10   :  { %3311 = shalt.err (!%p3308_p7)
}
  0x11   :  { %s3363_s11 = smov 256   ;;  %s3364_s12 = smov 16  }
  0x12   :  { %28 = dma.hbm_to_vmem [thread:$0]  %s3572_s1, 28672, %s23_s25, [#allocation3], %s3363_s11, %s3363_s11, %s3364_s12  }
  0x13   :  { %s3365_s15 = smov [#allocation5]   ;;  %s3312_s19 = scalar_lea.hbm %s3574_s3, 8192 }
  0x14   :  { %s36_s16 = sshll.u32 %s3365_s15, 4  ;;  %p3313_p8 = scmp.ne.s32.totalorder %s3574_s3, %s3312_s19  ;;  %s37_s16 = int_to_ptr.vmem [resolvable:$true] %s36_s16 }
  0x15   :  { %p3316_p9 = scmp.lt.u32.totalorder %s3312_s19, %s3574_s3 }
  0x17   :  { %p3318_p10 = pnand %p3316_p9, %p3313_p8 }
  0x19   :  { %3321 = shalt.err (!%p3318_p10)
}
  0x1a   :  { %s3322_s24 = scalar_lea.vmem %s37_s16, 8192  ;;  %p3327_p12 = scmp.lt.s32.totalorder %s37_s16, %s37_s16 }
  0x1b   :  { %p3323_p11 = scmp.ne.s32.totalorder %s37_s16, %s3322_s24  ;;  %p3328_p13 = scmp.lt.s32.totalorder %s3322_s24, %s3322_s24 }
  0x1d   :  { %p3329_p0 = por %p3328_p13, %p3327_p12 }
  0x1f   :  { %p3330_p1 = pnand %p3329_p0, %p3323_p11 }
  0x21   :  { %3333 = shalt.err (!%p3330_p1)
}
  0x22   :  { %s3366_s1 = smov 128   ;;  %s3367_s25 = smov 8  }
  0x23   :  { %42 = dma.hbm_to_vmem [thread:$0]  %s3574_s3, 8192, %s37_s16, [#allocation6], %s3366_s1, %s3366_s1, %s3367_s25  }
  0x24   :  { %3356 = dma.done.wait [#allocation3], 28672  }
  0x25   :  { %3357 = vsyncadd [#allocation3], 4294938624 }
  0x26   :  { %3358 = dma.done.wait [#allocation6], 8192  }
  0x27   :  { %3359 = vsyncadd [#allocation6], 4294959104  ;;  %v2835_v0 = vld [vmem:[#allocation2 + $0x4] ss:$16 sps:$4 sm:$0xff]   ;;  %v2839_v2 = vld [vmem:[#allocation2] ss:$16 sps:$4 sm:$0xff]  }
  0x28   :  { %v2837_v1 = vld [vmem:[#allocation2 + $0x204] ss:$16 sps:$4 sm:$0xff]   ;;  %1451 = vmatprep.subr.bf16.mxu1 %v2835_v0  ;;  %v2840_v3 = vld [vmem:[#allocation2 + $0x200] ss:$16 sps:$4 sm:$0xff]   ;;  %v57_v48 = vld [vmem:[%s3571_s0 + $0x8] sm:$0xff]  ;;  %s3369_s19 = smov [#allocation7]  }
  0x29   :  { %1492 = vmatprep.subr.bf16.mxu0 %v2837_v1  ;;  %v2841_v4 = vld [vmem:[#allocation2 + $0x24] ss:$16 sps:$4 sm:$0xff]   ;;  %1452 = vmatpush1.bf16.msra.mxu1 %v2839_v2  ;;  %v2845_v6 = vld [vmem:[#allocation2 + $0x20] ss:$16 sps:$4 sm:$0xff]   ;;  %v3442_v51 = vcombine.high %v57_v48, %v57_v48  ;;  %s2451_s20 = sshll.u32 %s3369_s19, 4  ;;  %s2452_s20 = int_to_ptr.vmem [resolvable:$true] %s2451_s20 }
  0x2a   :  { %1493 = vmatpush1.bf16.msra.mxu0 %v2840_v3  ;;  %v2843_v5 = vld [vmem:[#allocation2 + $0x224] ss:$16 sps:$4 sm:$0xff]   ;;  %1453 = vmatprep.subr.bf16.mxu1 %v2841_v4  ;;  %v2846_v7 = vld [vmem:[#allocation2 + $0x220] ss:$16 sps:$4 sm:$0xff]   ;;  %s3334_s21 = scalar_lea.vmem %s2452_s20, 128  ;;  %p3339_p3 = scmp.lt.s32.totalorder %s2452_s20, %s2452_s20 }
  0x2b   :  { %1494 = vmatprep.subr.bf16.mxu0 %v2843_v5  ;;  %v2847_v8 = vld [vmem:[#allocation2 + $0x44] ss:$16 sps:$4 sm:$0xff]   ;;  %v2851_v10 = vld [vmem:[#allocation2 + $0x40] ss:$16 sps:$4 sm:$0xff]   ;;  %1524 = vmatprep.mubr.bf16.mxu0 %v3442_v51  ;;  %v2940_v5 = vld [vmem:[#allocation2 + $0xc] ss:$16 sps:$4 sm:$0xff]   ;;  %p3335_p2 = scmp.ne.s32.totalorder %s2452_s20, %s3334_s21  ;;  %p3340_p4 = scmp.lt.s32.totalorder %s3334_s21, %s3334_s21 }
  0x2c   :  { %v2849_v9 = vld [vmem:[#allocation2 + $0x244] ss:$16 sps:$4 sm:$0xff]   ;;  %v2852_v11 = vld [vmem:[#allocation2 + $0x240] ss:$16 sps:$4 sm:$0xff]  }
  0x2d   :  { %1454 = vmatpush1.bf16.msra.mxu1 %v2845_v6  ;;  %v2853_v12 = vld [vmem:[#allocation2 + $0x64] ss:$16 sps:$4 sm:$0xff]   ;;  %v2857_v14 = vld [vmem:[#allocation2 + $0x60] ss:$16 sps:$4 sm:$0xff]   ;;  %p3341_p5 = por %p3340_p4, %p3339_p3 }
  0x2e   :  { %1495 = vmatpush1.bf16.msra.mxu0 %v2846_v7  ;;  %1455 = vmatprep.subr.bf16.mxu1 %v2847_v8  ;;  %v2855_v13 = vld [vmem:[#allocation2 + $0x264] ss:$16 sps:$4 sm:$0xff]   ;;  %v2858_v15 = vld [vmem:[#allocation2 + $0x260] ss:$16 sps:$4 sm:$0xff]   ;;  %v3448_v7 = vcombine.low %v57_v48, %v57_v48 }
  0x2f   :  { %1496 = vmatprep.subr.bf16.mxu0 %v2849_v9  ;;  %v2859_v16 = vld [vmem:[#allocation2 + $0x84] ss:$16 sps:$4 sm:$0xff]   ;;  %v2863_v18 = vld [vmem:[#allocation2 + $0x80] ss:$16 sps:$4 sm:$0xff]   ;;  %v2938_v9 = vld [vmem:[#allocation2 + $0x8] ss:$16 sps:$4 sm:$0xff]   ;;  %p3342_p6 = pnand %p3341_p5, %p3335_p2 }
  0x30   :  { %v2861_v17 = vld [vmem:[#allocation2 + $0x284] ss:$16 sps:$4 sm:$0xff]   ;;  %v2864_v19 = vld [vmem:[#allocation2 + $0x280] ss:$16 sps:$4 sm:$0xff]  }
  0x31   :  { %1456 = vmatpush1.bf16.msra.mxu1 %v2851_v10  ;;  %v2865_v20 = vld [vmem:[#allocation2 + $0xa4] ss:$16 sps:$4 sm:$0xff]   ;;  %v2869_v22 = vld [vmem:[#allocation2 + $0xa0] ss:$16 sps:$4 sm:$0xff]  }
  0x32   :  { %1497 = vmatpush1.bf16.msra.mxu0 %v2852_v11  ;;  %1457 = vmatprep.subr.bf16.mxu1 %v2853_v12  ;;  %v2867_v21 = vld [vmem:[#allocation2 + $0x2a4] ss:$16 sps:$4 sm:$0xff]   ;;  %v2870_v23 = vld [vmem:[#allocation2 + $0x2a0] ss:$16 sps:$4 sm:$0xff]   ;;  %v2946_v11 = vld [vmem:[#allocation2 + $0x2c] ss:$16 sps:$4 sm:$0xff]  }
  0x33   :  { %1498 = vmatprep.subr.bf16.mxu0 %v2855_v13  ;;  %v2871_v24 = vld [vmem:[#allocation2 + $0xc4] ss:$16 sps:$4 sm:$0xff]   ;;  %v2875_v26 = vld [vmem:[#allocation2 + $0xc0] ss:$16 sps:$4 sm:$0xff]   ;;  %v2944_v13 = vld [vmem:[#allocation2 + $0x28] ss:$16 sps:$4 sm:$0xff]  }
  0x34   :  { %v2873_v25 = vld [vmem:[#allocation2 + $0x2c4] ss:$16 sps:$4 sm:$0xff]   ;;  %v2876_v27 = vld [vmem:[#allocation2 + $0x2c0] ss:$16 sps:$4 sm:$0xff]  }
  0x35   :  { %1458 = vmatpush1.bf16.msra.mxu1 %v2857_v14  ;;  %v2877_v28 = vld [vmem:[#allocation2 + $0xe4] ss:$16 sps:$4 sm:$0xff]   ;;  %v2881_v30 = vld [vmem:[#allocation2 + $0xe0] ss:$16 sps:$4 sm:$0xff]  }
  0x36   :  { %1499 = vmatpush1.bf16.msra.mxu0 %v2858_v15  ;;  %1459 = vmatprep.subr.bf16.mxu1 %v2859_v16  ;;  %v2879_v29 = vld [vmem:[#allocation2 + $0x2e4] ss:$16 sps:$4 sm:$0xff]   ;;  %v2882_v31 = vld [vmem:[#allocation2 + $0x2e0] ss:$16 sps:$4 sm:$0xff]   ;;  %v2952_v15 = vld [vmem:[#allocation2 + $0x4c] ss:$16 sps:$4 sm:$0xff]  }
  0x37   :  { %1500 = vmatprep.subr.bf16.mxu0 %v2861_v17  ;;  %v2883_v32 = vld [vmem:[#allocation2 + $0x104] ss:$16 sps:$4 sm:$0xff]   ;;  %v2887_v34 = vld [vmem:[#allocation2 + $0x100] ss:$16 sps:$4 sm:$0xff]   ;;  %v2950_v17 = vld [vmem:[#allocation2 + $0x48] ss:$16 sps:$4 sm:$0xff]  }
  0x38   :  { %v2885_v33 = vld [vmem:[#allocation2 + $0x304] ss:$16 sps:$4 sm:$0xff]   ;;  %v2888_v35 = vld [vmem:[#allocation2 + $0x300] ss:$16 sps:$4 sm:$0xff]  }
  0x39   :  { %1460 = vmatpush1.bf16.msra.mxu1 %v2863_v18  ;;  %v2889_v36 = vld [vmem:[#allocation2 + $0x124] ss:$16 sps:$4 sm:$0xff]   ;;  %v2893_v38 = vld [vmem:[#allocation2 + $0x120] ss:$16 sps:$4 sm:$0xff]  }
  0x3a   :  { %1501 = vmatpush1.bf16.msra.mxu0 %v2864_v19  ;;  %1461 = vmatprep.subr.bf16.mxu1 %v2865_v20  ;;  %v2891_v37 = vld [vmem:[#allocation2 + $0x324] ss:$16 sps:$4 sm:$0xff]   ;;  %v2894_v39 = vld [vmem:[#allocation2 + $0x320] ss:$16 sps:$4 sm:$0xff]   ;;  %v2958_v19 = vld [vmem:[#allocation2 + $0x6c] ss:$16 sps:$4 sm:$0xff]  }
  0x3b   :  { %1502 = vmatprep.subr.bf16.mxu0 %v2867_v21  ;;  %v2895_v40 = vld [vmem:[#allocation2 + $0x144] ss:$16 sps:$4 sm:$0xff]   ;;  %v2899_v42 = vld [vmem:[#allocation2 + $0x140] ss:$16 sps:$4 sm:$0xff]   ;;  %v2956_v21 = vld [vmem:[#allocation2 + $0x68] ss:$16 sps:$4 sm:$0xff]  }
  0x3c   :  { %v2897_v41 = vld [vmem:[#allocation2 + $0x344] ss:$16 sps:$4 sm:$0xff]   ;;  %v2900_v43 = vld [vmem:[#allocation2 + $0x340] ss:$16 sps:$4 sm:$0xff]  }
  0x3d   :  { %1462 = vmatpush1.bf16.msra.mxu1 %v2869_v22  ;;  %v2901_v44 = vld [vmem:[#allocation2 + $0x164] ss:$16 sps:$4 sm:$0xff]   ;;  %v2905_v49 = vld [vmem:[#allocation2 + $0x160] ss:$16 sps:$4 sm:$0xff]  }
  0x3e   :  { %1503 = vmatpush1.bf16.msra.mxu0 %v2870_v23  ;;  %1463 = vmatprep.subr.bf16.mxu1 %v2871_v24  ;;  %v2903_v45 = vld [vmem:[#allocation2 + $0x364] ss:$16 sps:$4 sm:$0xff]   ;;  %v2906_v50 = vld [vmem:[#allocation2 + $0x360] ss:$16 sps:$4 sm:$0xff]   ;;  %v2964_v23 = vld [vmem:[#allocation2 + $0x8c] ss:$16 sps:$4 sm:$0xff]  }
  0x3f   :  { %1504 = vmatprep.subr.bf16.mxu0 %v2873_v25  ;;  %v56_v46 = vld [vmem:[%s3571_s0] sm:$0xff]  ;;  %v2962_v25 = vld [vmem:[#allocation2 + $0x88] ss:$16 sps:$4 sm:$0xff]  }
  0x40   :  { %v3437_v47 = vcombine.high %v56_v46, %v56_v46  ;;  %v2907_v52 = vld [vmem:[#allocation2 + $0x184] ss:$16 sps:$4 sm:$0xff]   ;;  %v2911_v54 = vld [vmem:[#allocation2 + $0x180] ss:$16 sps:$4 sm:$0xff]   ;;  %v3446_v6 = vcombine.low %v56_v46, %v56_v46 }
  0x41   :  { %1464 = vmatpush1.bf16.msra.mxu1 %v2875_v26  ;;  %v2909_v53 = vld [vmem:[#allocation2 + $0x384] ss:$16 sps:$4 sm:$0xff]   ;;  %v2912_v55 = vld [vmem:[#allocation2 + $0x380] ss:$16 sps:$4 sm:$0xff]  }
  0x42   :  { %1505 = vmatpush1.bf16.msra.mxu0 %v2876_v27  ;;  %1465 = vmatprep.subr.bf16.mxu1 %v2877_v28  ;;  %v2913_v56 = vld [vmem:[#allocation2 + $0x1a4] ss:$16 sps:$4 sm:$0xff]   ;;  %v2917_v58 = vld [vmem:[#allocation2 + $0x1a0] ss:$16 sps:$4 sm:$0xff]   ;;  %v2970_v27 = vld [vmem:[#allocation2 + $0xac] ss:$16 sps:$4 sm:$0xff]  }
  0x43   :  { %1506 = vmatprep.subr.bf16.mxu0 %v2879_v29  ;;  %1483 = vmatprep.mubr.bf16.mxu1 %v3437_v47  ;;  %v2915_v57 = vld [vmem:[#allocation2 + $0x3a4] ss:$16 sps:$4 sm:$0xff]   ;;  %v2918_v59 = vld [vmem:[#allocation2 + $0x3a0] ss:$16 sps:$4 sm:$0xff]   ;;  %v2968_v29 = vld [vmem:[#allocation2 + $0xa8] ss:$16 sps:$4 sm:$0xff]  }
  0x44   :  { %v2919_v60 = vld [vmem:[#allocation2 + $0x1c4] ss:$16 sps:$4 sm:$0xff]   ;;  %v2923_v62 = vld [vmem:[#allocation2 + $0x1c0] ss:$16 sps:$4 sm:$0xff]  }
  0x45   :  { %1466 = vmatpush1.bf16.msra.mxu1 %v2881_v30  ;;  %v2921_v61 = vld [vmem:[#allocation2 + $0x3c4] ss:$16 sps:$4 sm:$0xff]   ;;  %v2924_v63 = vld [vmem:[#allocation2 + $0x3c0] ss:$16 sps:$4 sm:$0xff]  }
  0x46   :  { %1507 = vmatpush1.bf16.msra.mxu0 %v2882_v31  ;;  %1467 = vmatprep.subr.bf16.mxu1 %v2883_v32  ;;  %v2925_v0 = vld [vmem:[#allocation2 + $0x1e4] ss:$16 sps:$4 sm:$0xff]   ;;  %v2929_v2 = vld [vmem:[#allocation2 + $0x1e0] ss:$16 sps:$4 sm:$0xff]   ;;  %v2976_v31 = vld [vmem:[#allocation2 + $0xcc] ss:$16 sps:$4 sm:$0xff]  }
  0x47   :  { %1508 = vmatprep.subr.bf16.mxu0 %v2885_v33  ;;  %v2927_v1 = vld [vmem:[#allocation2 + $0x3e4] ss:$16 sps:$4 sm:$0xff]   ;;  %v2930_v3 = vld [vmem:[#allocation2 + $0x3e0] ss:$16 sps:$4 sm:$0xff]  }
  0x48   :  { %v2937_v4 = vld [vmem:[#allocation2 + $0x404] ss:$16 sps:$4 sm:$0xff]   ;;  %v2935_v8 = vld [vmem:[#allocation2 + $0x400] ss:$16 sps:$4 sm:$0xff]  }
  0x49   :  { %1468 = vmatpush1.bf16.msra.mxu1 %v2887_v34  ;;  %v2943_v10 = vld [vmem:[#allocation2 + $0x424] ss:$16 sps:$4 sm:$0xff]   ;;  %v2941_v12 = vld [vmem:[#allocation2 + $0x420] ss:$16 sps:$4 sm:$0xff]  }
  0x4a   :  { %1509 = vmatpush1.bf16.msra.mxu0 %v2888_v35  ;;  %1469 = vmatprep.subr.bf16.mxu1 %v2889_v36  ;;  %v2949_v14 = vld [vmem:[#allocation2 + $0x444] ss:$16 sps:$4 sm:$0xff]   ;;  %v2947_v16 = vld [vmem:[#allocation2 + $0x440] ss:$16 sps:$4 sm:$0xff]   ;;  %v2974_v35 = vld [vmem:[#allocation2 + $0xc8] ss:$16 sps:$4 sm:$0xff]  }
  0x4b   :  { %1510 = vmatprep.subr.bf16.mxu0 %v2891_v37  ;;  %v2955_v18 = vld [vmem:[#allocation2 + $0x464] ss:$16 sps:$4 sm:$0xff]   ;;  %v2953_v20 = vld [vmem:[#allocation2 + $0x460] ss:$16 sps:$4 sm:$0xff]   ;;  %v2982_v37 = vld [vmem:[#allocation2 + $0xec] ss:$16 sps:$4 sm:$0xff]  }
  0x4c   :  { %v2961_v22 = vld [vmem:[#allocation2 + $0x484] ss:$16 sps:$4 sm:$0xff]   ;;  %v2959_v24 = vld [vmem:[#allocation2 + $0x480] ss:$16 sps:$4 sm:$0xff]  }
  0x4d   :  { %1470 = vmatpush1.bf16.msra.mxu1 %v2893_v38  ;;  %v2967_v26 = vld [vmem:[#allocation2 + $0x4a4] ss:$16 sps:$4 sm:$0xff]   ;;  %v2965_v28 = vld [vmem:[#allocation2 + $0x4a0] ss:$16 sps:$4 sm:$0xff]  }
  0x4e   :  { %1511 = vmatpush1.bf16.msra.mxu0 %v2894_v39  ;;  %1471 = vmatprep.subr.bf16.mxu1 %v2895_v40  ;;  %v2973_v30 = vld [vmem:[#allocation2 + $0x4c4] ss:$16 sps:$4 sm:$0xff]   ;;  %v2971_v33 = vld [vmem:[#allocation2 + $0x4c0] ss:$16 sps:$4 sm:$0xff]   ;;  %v2980_v39 = vld [vmem:[#allocation2 + $0xe8] ss:$16 sps:$4 sm:$0xff]  }
  0x4f   :  { %1512 = vmatprep.subr.bf16.mxu0 %v2897_v41  ;;  %v3456_v32 = vld [vmem:[%s3571_s0 + $0x10] sm:$0xff]  ;;  %v2988_v41 = vld [vmem:[#allocation2 + $0x10c] ss:$16 sps:$4 sm:$0xff]  }
  0x50   :  { %v3460_v34 = vcombine.high %v3456_v32, %v3456_v32  ;;  %v2979_v36 = vld [vmem:[#allocation2 + $0x4e4] ss:$16 sps:$4 sm:$0xff]   ;;  %v2977_v38 = vld [vmem:[#allocation2 + $0x4e0] ss:$16 sps:$4 sm:$0xff]  }
  0x51   :  { %1472 = vmatpush1.bf16.msra.mxu1 %v2899_v42  ;;  %v2985_v40 = vld [vmem:[#allocation2 + $0x504] ss:$16 sps:$4 sm:$0xff]   ;;  %v2983_v42 = vld [vmem:[#allocation2 + $0x500] ss:$16 sps:$4 sm:$0xff]  }
  0x52   :  { %1513 = vmatpush1.bf16.msra.mxu0 %v2900_v43  ;;  %1473 = vmatprep.subr.bf16.mxu1 %v2901_v44  ;;  %v2986_v43 = vld [vmem:[#allocation2 + $0x108] ss:$16 sps:$4 sm:$0xff]   ;;  %v2991_v44 = vld [vmem:[#allocation2 + $0x524] ss:$16 sps:$4 sm:$0xff]   ;;  %v2989_v46 = vld [vmem:[#allocation2 + $0x520] ss:$16 sps:$4 sm:$0xff]  }
  0x53   :  { %1514 = vmatprep.subr.bf16.mxu0 %v2903_v45  ;;  %v2994_v45 = vld [vmem:[#allocation2 + $0x12c] ss:$16 sps:$4 sm:$0xff]   ;;  %v2997_v48 = vld [vmem:[#allocation2 + $0x544] ss:$16 sps:$4 sm:$0xff]  }
  0x55   :  { %1474 = vmatpush1.bf16.msra.mxu1 %v2905_v49  ;;  %v3000_v49 = vld [vmem:[#allocation2 + $0x14c] ss:$16 sps:$4 sm:$0xff]  }
  0x56   :  { %1515 = vmatpush1.bf16.msra.mxu0 %v2906_v50  ;;  %1475 = vmatprep.subr.bf16.mxu1 %v2907_v52  ;;  %v2995_v50 = vld [vmem:[#allocation2 + $0x540] ss:$16 sps:$4 sm:$0xff]   ;;  %v2998_v52 = vld [vmem:[#allocation2 + $0x148] ss:$16 sps:$4 sm:$0xff]  }
  0x57   :  { %1516 = vmatprep.subr.bf16.mxu0 %v2909_v53  ;;  %v3003_v53 = vld [vmem:[#allocation2 + $0x564] ss:$16 sps:$4 sm:$0xff]  }
  0x59   :  { %1476 = vmatpush1.bf16.msra.mxu1 %v2911_v54  ;;  %v3006_v54 = vld [vmem:[#allocation2 + $0x16c] ss:$16 sps:$4 sm:$0xff]  }
  0x5a   :  { %1517 = vmatpush1.bf16.msra.mxu0 %v2912_v55  ;;  %1477 = vmatprep.subr.bf16.mxu1 %v2913_v56  ;;  %v3001_v55 = vld [vmem:[#allocation2 + $0x560] ss:$16 sps:$4 sm:$0xff]   ;;  %v3004_v56 = vld [vmem:[#allocation2 + $0x168] ss:$16 sps:$4 sm:$0xff]  }
  0x5b   :  { %1518 = vmatprep.subr.bf16.mxu0 %v2915_v57  ;;  %v3009_v57 = vld [vmem:[#allocation2 + $0x584] ss:$16 sps:$4 sm:$0xff]  }
  0x5d   :  { %1478 = vmatpush1.bf16.msra.mxu1 %v2917_v58  ;;  %v3012_v58 = vld [vmem:[#allocation2 + $0x18c] ss:$16 sps:$4 sm:$0xff]  }
  0x5e   :  { %1519 = vmatpush1.bf16.msra.mxu0 %v2918_v59  ;;  %1479 = vmatprep.subr.bf16.mxu1 %v2919_v60  ;;  %v3007_v59 = vld [vmem:[#allocation2 + $0x580] ss:$16 sps:$4 sm:$0xff]   ;;  %v3010_v60 = vld [vmem:[#allocation2 + $0x188] ss:$16 sps:$4 sm:$0xff]  }
  0x5f   :  { %1520 = vmatprep.subr.bf16.mxu0 %v2921_v61  ;;  %v3015_v61 = vld [vmem:[#allocation2 + $0x5a4] ss:$16 sps:$4 sm:$0xff]  }
  0x61   :  { %1480 = vmatpush1.bf16.msra.mxu1 %v2923_v62  ;;  %v3018_v62 = vld [vmem:[#allocation2 + $0x1ac] ss:$16 sps:$4 sm:$0xff]  }
  0x62   :  { %1521 = vmatpush1.bf16.msra.mxu0 %v2924_v63  ;;  %1481 = vmatprep.subr.bf16.mxu1 %v2925_v0  ;;  %v3013_v63 = vld [vmem:[#allocation2 + $0x5a0] ss:$16 sps:$4 sm:$0xff]   ;;  %v3016_v0 = vld [vmem:[#allocation2 + $0x1a8] ss:$16 sps:$4 sm:$0xff]  }
  0x63   :  { %1522 = vmatprep.subr.bf16.mxu0 %v2927_v1  ;;  %v3021_v1 = vld [vmem:[#allocation2 + $0x5c4] ss:$16 sps:$4 sm:$0xff]  }
  0x65   :  { %1482 = vmatpush1.bf16.msra.mxu1 %v2929_v2  ;;  %v3024_v2 = vld [vmem:[#allocation2 + $0x1cc] ss:$16 sps:$4 sm:$0xff]  }
  0x66   :  { %1523 = vmatpush1.bf16.msra.mxu0 %v2930_v3  ;;  %1615 = vmatprep.subr.bf16.mxu1 %v2940_v5  ;;  %v3019_v3 = vld [vmem:[#allocation2 + $0x5c0] ss:$16 sps:$4 sm:$0xff]   ;;  %v3027_v5 = vld [vmem:[#allocation2 + $0x5e4] ss:$16 sps:$4 sm:$0xff]  }
  0x67   :  { %1533 = vmatprep.subr.bf16.mxu0 %v2937_v4  ;;  %v3022_v4 = vld [vmem:[#allocation2 + $0x1c8] ss:$16 sps:$4 sm:$0xff]  }
  0x68   :  { %1484 = vmatmul.mubr.bf16.vlgmr.msra.gmra.mrb[0].mxu1 %v3446_v6 }
  0x69   :  { %1525 = vmatmul.mubr.bf16.vlgmr.msra.gmra.mrb[0].mxu0 %v3448_v7  ;;  %1616 = vmatpush1.bf16.msra.mxu1 %v2938_v9  ;;  %v3025_v9 = vld [vmem:[#allocation2 + $0x5e0] ss:$16 sps:$4 sm:$0xff]  }
  0x6a   :  { %1534 = vmatpush1.bf16.msra.mxu0 %v2935_v8  ;;  %1617 = vmatprep.subr.bf16.mxu1 %v2946_v11  ;;  %v3030_v8 = vld [vmem:[#allocation2 + $0x1ec] ss:$16 sps:$4 sm:$0xff]   ;;  %v3035_v11 = vld [vmem:[#allocation2 + $0x604] ss:$16 sps:$4 sm:$0xff]  }
  0x6b   :  { %1535 = vmatprep.subr.bf16.mxu0 %v2943_v10  ;;  %1647 = vmatprep.mubr.bf16.mxu1 %v3437_v47  ;;  %v2992_v47 = vld [vmem:[#allocation2 + $0x128] ss:$16 sps:$4 sm:$0xff]  }
  0x6c   :  { %1565 = vmatprep.mubr.bf16.mxu0 %v3460_v34  ;;  %v3028_v10 = vld [vmem:[#allocation2 + $0x1e8] ss:$16 sps:$4 sm:$0xff]  }
  0x6d   :  { %1618 = vmatpush1.bf16.msra.mxu1 %v2944_v13  ;;  %v3465_v13 = vcombine.low %v3456_v32, %v3456_v32  ;;  %v3068_v32 = vld [vmem:[#allocation2 + $0x2ac] ss:$16 sps:$4 sm:$0xff]  }
  0x6e   :  { %1536 = vmatpush1.bf16.msra.mxu0 %v2941_v12  ;;  %1619 = vmatprep.subr.bf16.mxu1 %v2952_v15  ;;  %v3038_v12 = vld [vmem:[#allocation2 + $0x20c] ss:$16 sps:$4 sm:$0xff]   ;;  %v3036_v15 = vld [vmem:[#allocation2 + $0x208] ss:$16 sps:$4 sm:$0xff]  }
  0x6f   :  { %1537 = vmatprep.subr.bf16.mxu0 %v2949_v14  ;;  %v3033_v14 = vld [vmem:[#allocation2 + $0x600] ss:$16 sps:$4 sm:$0xff]  }
  0x71   :  { %1620 = vmatpush1.bf16.msra.mxu1 %v2950_v17  ;;  %v3044_v17 = vld [vmem:[#allocation2 + $0x22c] ss:$16 sps:$4 sm:$0xff]  }
  0x72   :  { %1538 = vmatpush1.bf16.msra.mxu0 %v2947_v16  ;;  %1621 = vmatprep.subr.bf16.mxu1 %v2958_v19  ;;  %v3041_v16 = vld [vmem:[#allocation2 + $0x624] ss:$16 sps:$4 sm:$0xff]   ;;  %v3042_v19 = vld [vmem:[#allocation2 + $0x228] ss:$16 sps:$4 sm:$0xff]  }
  0x73   :  { %1539 = vmatprep.subr.bf16.mxu0 %v2955_v18  ;;  %v3039_v18 = vld [vmem:[#allocation2 + $0x620] ss:$16 sps:$4 sm:$0xff]  }
  0x75   :  { %1622 = vmatpush1.bf16.msra.mxu1 %v2956_v21  ;;  %v3050_v21 = vld [vmem:[#allocation2 + $0x24c] ss:$16 sps:$4 sm:$0xff]  }
  0x76   :  { %1540 = vmatpush1.bf16.msra.mxu0 %v2953_v20  ;;  %1623 = vmatprep.subr.bf16.mxu1 %v2964_v23  ;;  %v3047_v20 = vld [vmem:[#allocation2 + $0x644] ss:$16 sps:$4 sm:$0xff]   ;;  %v3045_v23 = vld [vmem:[#allocation2 + $0x640] ss:$16 sps:$4 sm:$0xff]  }
  0x77   :  { %1541 = vmatprep.subr.bf16.mxu0 %v2961_v22  ;;  %v3368_v22 = vmov 0  }
  0x79   :  { %1624 = vmatpush1.bf16.msra.mxu1 %v2962_v25  ;;  %v3056_v25 = vld [vmem:[#allocation2 + $0x26c] ss:$16 sps:$4 sm:$0xff]  }
  0x7a   :  { %1542 = vmatpush1.bf16.msra.mxu0 %v2959_v24  ;;  %1625 = vmatprep.subr.bf16.mxu1 %v2970_v27  ;;  %v3048_v24 = vld [vmem:[#allocation2 + $0x248] ss:$16 sps:$4 sm:$0xff]  }
  0x7b   :  { %1543 = vmatprep.subr.bf16.mxu0 %v2967_v26  ;;  %v3051_v26 = vld [vmem:[#allocation2 + $0x660] ss:$16 sps:$4 sm:$0xff]   ;;  %v3054_v27 = vld [vmem:[#allocation2 + $0x268] ss:$16 sps:$4 sm:$0xff]  }
  0x7d   :  { %1626 = vmatpush1.bf16.msra.mxu1 %v2968_v29  ;;  %v3062_v29 = vld [vmem:[#allocation2 + $0x28c] ss:$16 sps:$4 sm:$0xff]  }
  0x7e   :  { %1544 = vmatpush1.bf16.msra.mxu0 %v2965_v28  ;;  %1627 = vmatprep.subr.bf16.mxu1 %v2976_v31  ;;  %v3059_v28 = vld [vmem:[#allocation2 + $0x684] ss:$16 sps:$4 sm:$0xff]  }
  0x7f   :  { %1545 = vmatprep.subr.bf16.mxu0 %v2973_v30  ;;  %v3057_v30 = vld [vmem:[#allocation2 + $0x680] ss:$16 sps:$4 sm:$0xff]   ;;  %v3065_v31 = vld [vmem:[#allocation2 + $0x6a4] ss:$16 sps:$4 sm:$0xff]  }
  0x81   :  { %1628 = vmatpush1.bf16.msra.mxu1 %v2974_v35  ;;  %v3066_v35 = vld [vmem:[#allocation2 + $0x2a8] ss:$16 sps:$4 sm:$0xff]  }
  0x82   :  { %1546 = vmatpush1.bf16.msra.mxu0 %v2971_v33  ;;  %1629 = vmatprep.subr.bf16.mxu1 %v2982_v37  ;;  %v3063_v33 = vld [vmem:[#allocation2 + $0x6a0] ss:$16 sps:$4 sm:$0xff]   ;;  %v3074_v37 = vld [vmem:[#allocation2 + $0x2cc] ss:$16 sps:$4 sm:$0xff]  }
  0x83   :  { %1547 = vmatprep.subr.bf16.mxu0 %v2979_v36  ;;  %v3071_v36 = vld [vmem:[#allocation2 + $0x6c4] ss:$16 sps:$4 sm:$0xff]  }
  0x85   :  { %1630 = vmatpush1.bf16.msra.mxu1 %v2980_v39  ;;  %v3072_v39 = vld [vmem:[#allocation2 + $0x2c8] ss:$16 sps:$4 sm:$0xff]  }
  0x86   :  { %1548 = vmatpush1.bf16.msra.mxu0 %v2977_v38  ;;  %1631 = vmatprep.subr.bf16.mxu1 %v2988_v41  ;;  %v3069_v38 = vld [vmem:[#allocation2 + $0x6c0] ss:$16 sps:$4 sm:$0xff]   ;;  %v3080_v41 = vld [vmem:[#allocation2 + $0x2ec] ss:$16 sps:$4 sm:$0xff]  }
  0x87   :  { %1549 = vmatprep.subr.bf16.mxu0 %v2985_v40  ;;  %v3077_v40 = vld [vmem:[#allocation2 + $0x6e4] ss:$16 sps:$4 sm:$0xff]  }
  0x89   :  { %1632 = vmatpush1.bf16.msra.mxu1 %v2986_v43  ;;  %v3078_v43 = vld [vmem:[#allocation2 + $0x2e8] ss:$16 sps:$4 sm:$0xff]  }
  0x8a   :  { %1550 = vmatpush1.bf16.msra.mxu0 %v2983_v42  ;;  %1633 = vmatprep.subr.bf16.mxu1 %v2994_v45  ;;  %v3075_v42 = vld [vmem:[#allocation2 + $0x6e0] ss:$16 sps:$4 sm:$0xff]   ;;  %v3474_v45 = vld [vmem:[%s3571_s0 + $0x18] ss:$0 sps:$4 sm:$0xff]  }
  0x8b   :  { %1551 = vmatprep.subr.bf16.mxu0 %v2991_v44  ;;  %v3084_v44 = vld [vmem:[#allocation2 + $0x30c] ss:$16 sps:$4 sm:$0xff]  }
  0x8d   :  { %1634 = vmatpush1.bf16.msra.mxu1 %v2992_v47  ;;  %v3087_v47 = vld [vmem:[#allocation2 + $0x32c] ss:$16 sps:$4 sm:$0xff]  }
  0x8e   :  { %1552 = vmatpush1.bf16.msra.mxu0 %v2989_v46  ;;  %1635 = vmatprep.subr.bf16.mxu1 %v3000_v49  ;;  %v3082_v46 = vld [vmem:[#allocation2 + $0x308] ss:$16 sps:$4 sm:$0xff]   ;;  %v3180_v49 = vld [vmem:[#allocation5 + $0x4] ss:$8 sps:$4 sm:$0xff]  }
  0x8f   :  { %1553 = vmatprep.subr.bf16.mxu0 %v2997_v48  ;;  %v3178_v48 = vld [vmem:[#allocation5] ss:$8 sps:$4 sm:$0xff]  }
  0x91   :  { %1636 = vmatpush1.bf16.msra.mxu1 %v2998_v52  ;;  %v3183_v52 = vld [vmem:[#allocation5 + $0x14] ss:$8 sps:$4 sm:$0xff]  }
  0x92   :  { %1554 = vmatpush1.bf16.msra.mxu0 %v2995_v50  ;;  %1637 = vmatprep.subr.bf16.mxu1 %v3006_v54  ;;  %v3085_v50 = vld [vmem:[#allocation2 + $0x328] ss:$16 sps:$4 sm:$0xff]  }
  0x93   :  { %1555 = vmatprep.subr.bf16.mxu0 %v3003_v53  ;;  %v3090_v53 = vld [vmem:[#allocation2 + $0x34c] ss:$16 sps:$4 sm:$0xff]   ;;  %v3181_v54 = vld [vmem:[#allocation5 + $0x10] ss:$8 sps:$4 sm:$0xff]  }
  0x95   :  { %1638 = vmatpush1.bf16.msra.mxu1 %v3004_v56  ;;  %v3088_v56 = vld [vmem:[#allocation2 + $0x348] ss:$16 sps:$4 sm:$0xff]  }
  0x96   :  { %1556 = vmatpush1.bf16.msra.mxu0 %v3001_v55  ;;  %1639 = vmatprep.subr.bf16.mxu1 %v3012_v58  ;;  %v3186_v55 = vld [vmem:[#allocation5 + $0x24] ss:$8 sps:$4 sm:$0xff]   ;;  %v3184_v58 = vld [vmem:[#allocation5 + $0x20] ss:$8 sps:$4 sm:$0xff]  }
  0x97   :  { %1557 = vmatprep.subr.bf16.mxu0 %v3009_v57  ;;  %v3093_v57 = vld [vmem:[#allocation2 + $0x36c] ss:$16 sps:$4 sm:$0xff]  }
  0x99   :  { %1640 = vmatpush1.bf16.msra.mxu1 %v3010_v60  ;;  %v3096_v60 = vld [vmem:[#allocation2 + $0x38c] ss:$16 sps:$4 sm:$0xff]  }
  0x9a   :  { %1558 = vmatpush1.bf16.msra.mxu0 %v3007_v59  ;;  %1641 = vmatprep.subr.bf16.mxu1 %v3018_v62  ;;  %v3091_v59 = vld [vmem:[#allocation2 + $0x368] ss:$16 sps:$4 sm:$0xff]  }
  0x9b   :  { %1559 = vmatprep.subr.bf16.mxu0 %v3015_v61  ;;  %v3189_v61 = vld [vmem:[#allocation5 + $0x34] ss:$8 sps:$4 sm:$0xff]   ;;  %v3187_v62 = vld [vmem:[#allocation5 + $0x30] ss:$8 sps:$4 sm:$0xff]  }
  0x9d   :  { %1642 = vmatpush1.bf16.msra.mxu1 %v3016_v0  ;;  %v3094_v0 = vld [vmem:[#allocation2 + $0x388] ss:$16 sps:$4 sm:$0xff]  }
  0x9e   :  { %1560 = vmatpush1.bf16.msra.mxu0 %v3013_v63  ;;  %1643 = vmatprep.subr.bf16.mxu1 %v3024_v2  ;;  %v3192_v63 = vld [vmem:[#allocation5 + $0x44] ss:$8 sps:$4 sm:$0xff]   ;;  %v3190_v2 = vld [vmem:[#allocation5 + $0x40] ss:$8 sps:$4 sm:$0xff]  }
  0x9f   :  { %1561 = vmatprep.subr.bf16.mxu0 %v3021_v1  ;;  %v3099_v1 = vld [vmem:[#allocation2 + $0x3ac] ss:$16 sps:$4 sm:$0xff]  }
  0xa1   :  { %1644 = vmatpush1.bf16.msra.mxu1 %v3022_v4  ;;  %v3097_v4 = vld [vmem:[#allocation2 + $0x3a8] ss:$16 sps:$4 sm:$0xff]  }
  0xa2   :  { %1562 = vmatpush1.bf16.msra.mxu0 %v3019_v3  ;;  %1645 = vmatprep.subr.bf16.mxu1 %v3030_v8  ;;  %v3195_v3 = vld [vmem:[#allocation5 + $0x54] ss:$8 sps:$4 sm:$0xff]   ;;  %v3193_v8 = vld [vmem:[#allocation5 + $0x50] ss:$8 sps:$4 sm:$0xff]  }
  0xa3   :  { %1563 = vmatprep.subr.bf16.mxu0 %v3027_v5  ;;  %v3102_v5 = vld [vmem:[#allocation2 + $0x3cc] ss:$16 sps:$4 sm:$0xff]  }
  0xa5   :  { %1646 = vmatpush1.bf16.msra.mxu1 %v3028_v10  ;;  %v3100_v10 = vld [vmem:[#allocation2 + $0x3c8] ss:$16 sps:$4 sm:$0xff]  }
  0xa6   :  { %1564 = vmatpush1.bf16.msra.mxu0 %v3025_v9  ;;  %1656 = vmatprep.subr.bf16.mxu1 %v3038_v12  ;;  %v3198_v9 = vld [vmem:[#allocation5 + $0x64] ss:$8 sps:$4 sm:$0xff]   ;;  %v3196_v12 = vld [vmem:[#allocation5 + $0x60] ss:$8 sps:$4 sm:$0xff]  }
  0xa7   :  { %1574 = vmatprep.subr.bf16.mxu0 %v3035_v11  ;;  %v3105_v11 = vld [vmem:[#allocation2 + $0x3ec] ss:$16 sps:$4 sm:$0xff]  }
  0xa8   :  { %1648 = vmatmul.mubr.bf16.vlgmr.msra.gmra.mrb[4].mxu1 %v3446_v6  ;;  %v3053_v6 = vld [vmem:[#allocation2 + $0x664] ss:$16 sps:$4 sm:$0xff]  }
  0xa9   :  { %1566 = vmatmul.mubr.bf16.vlgmr.msra.gmra.mrb[0].mxu0 %v3465_v13  ;;  %1657 = vmatpush1.bf16.msra.mxu1 %v3036_v15  ;;  %v3103_v15 = vld [vmem:[#allocation2 + $0x3e8] ss:$16 sps:$4 sm:$0xff]  }
  0xaa   :  { %1575 = vmatpush1.bf16.msra.mxu0 %v3033_v14  ;;  %1658 = vmatprep.subr.bf16.mxu1 %v3044_v17  ;;  %v3201_v14 = vld [vmem:[#allocation5 + $0x74] ss:$8 sps:$4 sm:$0xff]   ;;  %v3199_v17 = vld [vmem:[#allocation5 + $0x70] ss:$8 sps:$4 sm:$0xff]  }
  0xab   :  { %1576 = vmatprep.subr.bf16.mxu0 %v3041_v16  ;;  %1606 = vmatprep.mubr.bf16.mxu0 %v3368_v22  ;;  %v3108_v16 = vld [vmem:[#allocation2 + $0x40c] ss:$16 sps:$4 sm:$0xff]  }
  0xac   :  { %1688 = vmatprep.mubr.bf16.mxu1 %v3442_v51  ;;  %v3060_v51 = vld [vmem:[#allocation2 + $0x288] ss:$16 sps:$4 sm:$0xff]  }
  0xad   :  { %1659 = vmatpush1.bf16.msra.mxu1 %v3042_v19  ;;  %v3106_v19 = vld [vmem:[#allocation2 + $0x408] ss:$16 sps:$4 sm:$0xff]  }
  0xae   :  { %1577 = vmatpush1.bf16.msra.mxu0 %v3039_v18  ;;  %1660 = vmatprep.subr.bf16.mxu1 %v3050_v21  ;;  %v3204_v18 = vld [vmem:[#allocation5 + $0x84] ss:$8 sps:$4 sm:$0xff]   ;;  %v3202_v21 = vld [vmem:[#allocation5 + $0x80] ss:$8 sps:$4 sm:$0xff]  }
  0xaf   :  { %1578 = vmatprep.subr.bf16.mxu0 %v3047_v20  ;;  %v3111_v20 = vld [vmem:[#allocation2 + $0x42c] ss:$16 sps:$4 sm:$0xff]  }
  0xb1   :  { %1661 = vmatpush1.bf16.msra.mxu1 %v3048_v24  ;;  %v3109_v24 = vld [vmem:[#allocation2 + $0x428] ss:$16 sps:$4 sm:$0xff]  }
  0xb2   :  { %1579 = vmatpush1.bf16.msra.mxu0 %v3045_v23  ;;  %1662 = vmatprep.subr.bf16.mxu1 %v3056_v25  ;;  %v3207_v23 = vld [vmem:[#allocation5 + $0x94] ss:$8 sps:$4 sm:$0xff]   ;;  %v3205_v25 = vld [vmem:[#allocation5 + $0x90] ss:$8 sps:$4 sm:$0xff]  }
  0xb3   :  { %1580 = vmatprep.subr.bf16.mxu0 %v3053_v6  ;;  %v3114_v6 = vld [vmem:[#allocation2 + $0x44c] ss:$16 sps:$4 sm:$0xff]  }
  0xb5   :  { %1663 = vmatpush1.bf16.msra.mxu1 %v3054_v27  ;;  %v3112_v27 = vld [vmem:[#allocation2 + $0x448] ss:$16 sps:$4 sm:$0xff]  }
  0xb6   :  { %1581 = vmatpush1.bf16.msra.mxu0 %v3051_v26  ;;  %1664 = vmatprep.subr.bf16.mxu1 %v3062_v29  ;;  %v3210_v26 = vld [vmem:[#allocation5 + $0xa4] ss:$8 sps:$4 sm:$0xff]   ;;  %v3208_v29 = vld [vmem:[#allocation5 + $0xa0] ss:$8 sps:$4 sm:$0xff]  }
  0xb7   :  { %1582 = vmatprep.subr.bf16.mxu0 %v3059_v28  ;;  %v3117_v28 = vld [vmem:[#allocation2 + $0x46c] ss:$16 sps:$4 sm:$0xff]  }
  0xb9   :  { %1665 = vmatpush1.bf16.msra.mxu1 %v3060_v51  ;;  %v3120_v51 = vld [vmem:[#allocation2 + $0x48c] ss:$16 sps:$4 sm:$0xff]  }
  0xba   :  { %1583 = vmatpush1.bf16.msra.mxu0 %v3057_v30  ;;  %1666 = vmatprep.subr.bf16.mxu1 %v3068_v32  ;;  %v3115_v30 = vld [vmem:[#allocation2 + $0x468] ss:$16 sps:$4 sm:$0xff]  }
  0xbb   :  { %1584 = vmatprep.subr.bf16.mxu0 %v3065_v31  ;;  %v3216_v31 = vld [vmem:[#allocation5 + $0xc4] ss:$8 sps:$4 sm:$0xff]   ;;  %v3118_v32 = vld [vmem:[#allocation2 + $0x488] ss:$16 sps:$4 sm:$0xff]  }
  0xbd   :  { %1667 = vmatpush1.bf16.msra.mxu1 %v3066_v35  ;;  %v3214_v35 = vld [vmem:[#allocation5 + $0xc0] ss:$8 sps:$4 sm:$0xff]  }
  0xbe   :  { %1585 = vmatpush1.bf16.msra.mxu0 %v3063_v33  ;;  %1668 = vmatprep.subr.bf16.mxu1 %v3074_v37  ;;  %v3123_v33 = vld [vmem:[#allocation2 + $0x4ac] ss:$16 sps:$4 sm:$0xff]   ;;  %v3121_v37 = vld [vmem:[#allocation2 + $0x4a8] ss:$16 sps:$4 sm:$0xff]  }
  0xbf   :  { %1586 = vmatprep.subr.bf16.mxu0 %v3071_v36  ;;  %v3219_v36 = vld [vmem:[#allocation5 + $0xd4] ss:$8 sps:$4 sm:$0xff]  }
  0xc1   :  { %1669 = vmatpush1.bf16.msra.mxu1 %v3072_v39  ;;  %v3217_v39 = vld [vmem:[#allocation5 + $0xd0] ss:$8 sps:$4 sm:$0xff]  }
  0xc2   :  { %1587 = vmatpush1.bf16.msra.mxu0 %v3069_v38  ;;  %1670 = vmatprep.subr.bf16.mxu1 %v3080_v41  ;;  %v3126_v38 = vld [vmem:[#allocation2 + $0x4cc] ss:$16 sps:$4 sm:$0xff]  }
  0xc3   :  { %1588 = vmatprep.subr.bf16.mxu0 %v3077_v40  ;;  %v3124_v40 = vld [vmem:[#allocation2 + $0x4c8] ss:$16 sps:$4 sm:$0xff]   ;;  %v3129_v41 = vld [vmem:[#allocation2 + $0x4ec] ss:$16 sps:$4 sm:$0xff]  }
  0xc5   :  { %1671 = vmatpush1.bf16.msra.mxu1 %v3078_v43  ;;  %v3132_v43 = vld [vmem:[#allocation2 + $0x50c] ss:$16 sps:$4 sm:$0xff]  }
  0xc6   :  { %1589 = vmatpush1.bf16.msra.mxu0 %v3075_v42  ;;  %1672 = vmatprep.subr.bf16.mxu1 %v3084_v44  ;;  %v3127_v42 = vld [vmem:[#allocation2 + $0x4e8] ss:$16 sps:$4 sm:$0xff]  }
  0xc7   :  { %2183 = vmatprep.subr.bf16.mxu0 %v3180_v49  ;;  %v3130_v44 = vld [vmem:[#allocation2 + $0x508] ss:$16 sps:$4 sm:$0xff]  }
  0xc8   :  { %v3136_v49 = vld [vmem:[#allocation2 + $0x548] ss:$16 sps:$4 sm:$0xff]  }
  0xc9   :  { %1607 = vmatmul.mubr.bf16.vlgmr.msra.gmra.mrb[0].mxu0 %v3474_v45  ;;  %1673 = vmatpush1.bf16.msra.mxu1 %v3082_v46  ;;  %v3135_v46 = vld [vmem:[#allocation2 + $0x52c] ss:$16 sps:$4 sm:$0xff]  }
  0xca   :  { %1674 = vmatprep.subr.bf16.mxu1 %v3087_v47  ;;  %2184 = vmatpush1.bf16.msra.mxu0 %v3178_v48  ;;  %v3133_v47 = vld [vmem:[#allocation2 + $0x528] ss:$16 sps:$4 sm:$0xff]   ;;  %v3138_v48 = vld [vmem:[#allocation2 + $0x54c] ss:$16 sps:$4 sm:$0xff]  }
  0xcb   :  { %2185 = vmatprep.subr.bf16.mxu0 %v3183_v52  ;;  %v3139_v52 = vld [vmem:[#allocation2 + $0x568] ss:$16 sps:$4 sm:$0xff]  }
  0xcd   :  { %1675 = vmatpush1.bf16.msra.mxu1 %v3085_v50  ;;  %v3141_v50 = vld [vmem:[#allocation2 + $0x56c] ss:$16 sps:$4 sm:$0xff]  }
  0xce   :  { %1676 = vmatprep.subr.bf16.mxu1 %v3090_v53  ;;  %2186 = vmatpush1.bf16.msra.mxu0 %v3181_v54  ;;  %v3144_v53 = vld [vmem:[#allocation2 + $0x58c] ss:$16 sps:$4 sm:$0xff]   ;;  %v3142_v54 = vld [vmem:[#allocation2 + $0x588] ss:$16 sps:$4 sm:$0xff]  }
  0xcf   :  { %2187 = vmatprep.subr.bf16.mxu0 %v3186_v55  ;;  %v3147_v55 = vld [vmem:[#allocation2 + $0x5ac] ss:$16 sps:$4 sm:$0xff]  }
  0xd1   :  { %1677 = vmatpush1.bf16.msra.mxu1 %v3088_v56  ;;  %v3145_v56 = vld [vmem:[#allocation2 + $0x5a8] ss:$16 sps:$4 sm:$0xff]  }
  0xd2   :  { %1678 = vmatprep.subr.bf16.mxu1 %v3093_v57  ;;  %2188 = vmatpush1.bf16.msra.mxu0 %v3184_v58  ;;  %v3150_v57 = vld [vmem:[#allocation2 + $0x5cc] ss:$16 sps:$4 sm:$0xff]  }
  0xd3   :  { %2189 = vmatprep.subr.bf16.mxu0 %v3189_v61  ;;  %v3222_v58 = vld [vmem:[#allocation5 + $0xe4] ss:$8 sps:$4 sm:$0xff]  }
  0xd4   :  { %v3153_v61 = vld [vmem:[#allocation2 + $0x5ec] ss:$16 sps:$4 sm:$0xff]  }
  0xd5   :  { %1679 = vmatpush1.bf16.msra.mxu1 %v3091_v59  ;;  %v3220_v59 = vld [vmem:[#allocation5 + $0xe0] ss:$8 sps:$4 sm:$0xff]  }
  0xd6   :  { %1680 = vmatprep.subr.bf16.mxu1 %v3096_v60  ;;  %2190 = vmatpush1.bf16.msra.mxu0 %v3187_v62  ;;  %v3148_v60 = vld [vmem:[#allocation2 + $0x5c8] ss:$16 sps:$4 sm:$0xff]   ;;  %v3225_v62 = vld [vmem:[#allocation5 + $0xf4] ss:$8 sps:$4 sm:$0xff]  }
  0xd7   :  { %2191 = vmatprep.subr.bf16.mxu0 %v3192_v63  ;;  %v3223_v63 = vld [vmem:[#allocation5 + $0xf0] ss:$8 sps:$4 sm:$0xff]  }
  0xd9   :  { %1681 = vmatpush1.bf16.msra.mxu1 %v3094_v0  ;;  %v3151_v0 = vld [vmem:[#allocation2 + $0x5e8] ss:$16 sps:$4 sm:$0xff]  }
  0xda   :  { %1682 = vmatprep.subr.bf16.mxu1 %v3099_v1  ;;  %2192 = vmatpush1.bf16.msra.mxu0 %v3190_v2  ;;  %v3156_v1 = vld [vmem:[#allocation2 + $0x60c] ss:$16 sps:$4 sm:$0xff]  }
  0xdb   :  { %2193 = vmatprep.subr.bf16.mxu0 %v3195_v3  ;;  %v3228_v2 = vld [vmem:[#allocation5 + $0x104] ss:$8 sps:$4 sm:$0xff]   ;;  %v3154_v3 = vld [vmem:[#allocation2 + $0x608] ss:$16 sps:$4 sm:$0xff]  }
  0xdd   :  { %1683 = vmatpush1.bf16.msra.mxu1 %v3097_v4  ;;  %v3159_v4 = vld [vmem:[#allocation2 + $0x62c] ss:$16 sps:$4 sm:$0xff]  }
  0xde   :  { %1684 = vmatprep.subr.bf16.mxu1 %v3102_v5  ;;  %2194 = vmatpush1.bf16.msra.mxu0 %v3193_v8  ;;  %v3157_v5 = vld [vmem:[#allocation2 + $0x628] ss:$16 sps:$4 sm:$0xff]   ;;  %v3162_v8 = vld [vmem:[#allocation2 + $0x64c] ss:$16 sps:$4 sm:$0xff]  }
  0xdf   :  { %2195 = vmatprep.subr.bf16.mxu0 %v3198_v9  ;;  %v3160_v9 = vld [vmem:[#allocation2 + $0x648] ss:$16 sps:$4 sm:$0xff]  }
  0xe1   :  { %1685 = vmatpush1.bf16.msra.mxu1 %v3100_v10  ;;  %v3165_v10 = vld [vmem:[#allocation2 + $0x66c] ss:$16 sps:$4 sm:$0xff]  }
  0xe2   :  { %1686 = vmatprep.subr.bf16.mxu1 %v3105_v11  ;;  %2196 = vmatpush1.bf16.msra.mxu0 %v3196_v12  ;;  %v3163_v11 = vld [vmem:[#allocation2 + $0x668] ss:$16 sps:$4 sm:$0xff]   ;;  %v3168_v12 = vld [vmem:[#allocation2 + $0x68c] ss:$16 sps:$4 sm:$0xff]  }
  0xe3   :  { %2197 = vmatprep.subr.bf16.mxu0 %v3201_v14  ;;  %v3166_v14 = vld [vmem:[#allocation2 + $0x688] ss:$16 sps:$4 sm:$0xff]  }
  0xe5   :  { %1687 = vmatpush1.bf16.msra.mxu1 %v3103_v15  ;;  %v3171_v15 = vld [vmem:[#allocation2 + $0x6ac] ss:$16 sps:$4 sm:$0xff]  }
  0xe6   :  { %1697 = vmatprep.subr.bf16.mxu1 %v3108_v16  ;;  %2198 = vmatpush1.bf16.msra.mxu0 %v3199_v17  ;;  %v3174_v16 = vld [vmem:[#allocation2 + $0x6cc] ss:$16 sps:$4 sm:$0xff]  }
  0xe7   :  { %2199 = vmatprep.subr.bf16.mxu0 %v3204_v18 }
  0xe8   :  { %1689 = vmatmul.mubr.bf16.vlgmr.msra.gmra.mrb[4].mxu1 %v3448_v7  ;;  %v3213_v7 = vld [vmem:[#allocation5 + $0xb4] ss:$8 sps:$4 sm:$0xff]  }
  0xe9   :  { %1698 = vmatpush1.bf16.msra.mxu1 %v3106_v19  ;;  %1729 = vmatprep.mubr.bf16.mxu1 %v3460_v34  ;;  %v3211_v34 = vld [vmem:[#allocation5 + $0xb0] ss:$8 sps:$4 sm:$0xff]  }
  0xea   :  { %1699 = vmatprep.subr.bf16.mxu1 %v3111_v20  ;;  %2200 = vmatpush1.bf16.msra.mxu0 %v3202_v21  ;;  %v3172_v19 = vld [vmem:[#allocation2 + $0x6c8] ss:$16 sps:$4 sm:$0xff]   ;;  %v3177_v21 = vld [vmem:[#allocation2 + $0x6ec] ss:$16 sps:$4 sm:$0xff]  }
  0xeb   :  { %2201 = vmatprep.subr.bf16.mxu0 %v3207_v23  ;;  %v3175_v23 = vld [vmem:[#allocation2 + $0x6e8] ss:$16 sps:$4 sm:$0xff]  }
  0xed   :  { %1700 = vmatpush1.bf16.msra.mxu1 %v3109_v24  ;;  %v286_v24 = vlaneseq }
  0xee   :  { %1701 = vmatprep.subr.bf16.mxu1 %v3114_v6  ;;  %2202 = vmatpush1.bf16.msra.mxu0 %v3205_v25 }
  0xef   :  { %2203 = vmatprep.subr.bf16.mxu0 %v3210_v26  ;;  %v3482_v6 = vshrl.u32 %v286_v24, 7  ;;  %v3488_v26 = vld [vmem:[%s3573_s2] sm:$0xf] }
  0xf1   :  { %1702 = vmatpush1.bf16.msra.mxu1 %v3112_v27  ;;  %v288_v25 = vsub.s32 0, %v3482_v6  ;;  %v292_v27 = vsub.s32 1, %v3482_v6 }
  0xf2   :  { %1703 = vmatprep.subr.bf16.mxu1 %v3117_v28  ;;  %2204 = vmatpush1.bf16.msra.mxu0 %v3208_v29 }
  0xf3   :  { %2205 = vmatprep.subr.bf16.mxu0 %v3213_v7  ;;  %v289_v28 = vrot.slane %v3488_v26, %v288_v25 }
  0xf5   :  { %1704 = vmatpush1.bf16.msra.mxu1 %v3115_v30 }
  0xf6   :  { %1705 = vmatprep.subr.bf16.mxu1 %v3120_v51  ;;  %2206 = vmatpush1.bf16.msra.mxu0 %v3211_v34 }
  0xf7   :  { %2207 = vmatprep.subr.bf16.mxu0 %v3216_v31 }
  0xf9   :  { %1706 = vmatpush1.bf16.msra.mxu1 %v3118_v32 }
  0xfa   :  { %1707 = vmatprep.subr.bf16.mxu1 %v3123_v33  ;;  %2208 = vmatpush1.bf16.msra.mxu0 %v3214_v35 }
  0xfb   :  { %2209 = vmatprep.subr.bf16.mxu0 %v3219_v36 }
  0xfd   :  { %1708 = vmatpush1.bf16.msra.mxu1 %v3121_v37 }
  0xfe   :  { %1709 = vmatprep.subr.bf16.mxu1 %v3126_v38  ;;  %2210 = vmatpush1.bf16.msra.mxu0 %v3217_v39  ;;  %v3226_v38 = vld [vmem:[#allocation5 + $0x100] ss:$8 sps:$4 sm:$0xff]  }
  0xff   :  { %2211 = vmatprep.subr.bf16.mxu0 %v3222_v58  ;;  %v3238_v58 = vld [vmem:[#allocation5 + $0x140] ss:$8 sps:$4 sm:$0xff]  }
 0x101   :  { %1710 = vmatpush1.bf16.msra.mxu1 %v3124_v40  ;;  %v3231_v40 = vld [vmem:[#allocation5 + $0x114] ss:$8 sps:$4 sm:$0xff]  }
 0x102   :  { %1711 = vmatprep.subr.bf16.mxu1 %v3129_v41  ;;  %2212 = vmatpush1.bf16.msra.mxu0 %v3220_v59  ;;  %v3274_v41 = vld [vmem:[%s3576_s5 + $0x40] sm:$0xff]   ;;  %v3243_v59 = vld [vmem:[#allocation5 + $0x154] ss:$8 sps:$4 sm:$0xff]  }
 0x103   :  { %2213 = vmatprep.subr.bf16.mxu0 %v3225_v62  ;;  %v3241_v62 = vld [vmem:[#allocation5 + $0x150] ss:$8 sps:$4 sm:$0xff]  }
 0x105   :  { %1712 = vmatpush1.bf16.msra.mxu1 %v3127_v42  ;;  %v3275_v42 = vld [vmem:[%s3576_s5] sm:$0xff]  }
 0x106   :  { %1713 = vmatprep.subr.bf16.mxu1 %v3132_v43  ;;  %2214 = vmatpush1.bf16.msra.mxu0 %v3223_v63  ;;  %v3276_v43 = vld [vmem:[%s3576_s5 + $0x48] sm:$0xff]  }
 0x107   :  { %2224 = vmatprep.subr.bf16.mxu0 %v3228_v2  ;;  %v3246_v63 = vld [vmem:[#allocation5 + $0x164] ss:$8 sps:$4 sm:$0xff]   ;;  %v3249_v2 = vld [vmem:[#allocation5 + $0x174] ss:$8 sps:$4 sm:$0xff]  }
 0x109   :  { %1714 = vmatpush1.bf16.msra.mxu1 %v3130_v44  ;;  %v3229_v44 = vld [vmem:[#allocation5 + $0x110] ss:$8 sps:$4 sm:$0xff]  }
 0x10a   :  { %1715 = vmatprep.subr.bf16.mxu1 %v3135_v46  ;;  %v3234_v46 = vld [vmem:[#allocation5 + $0x124] ss:$8 sps:$4 sm:$0xff]  }
 0x10d   :  { %1716 = vmatpush1.bf16.msra.mxu1 %v3133_v47  ;;  %v3277_v47 = vld [vmem:[%s3576_s5 + $0x8] sm:$0xff]  }
 0x10e   :  { %1717 = vmatprep.subr.bf16.mxu1 %v3138_v48  ;;  %v3278_v48 = vld [vmem:[%s3576_s5 + $0x50] sm:$0xff]  }
 0x111   :  { %1718 = vmatpush1.bf16.msra.mxu1 %v3136_v49  ;;  %v3232_v49 = vld [vmem:[#allocation5 + $0x120] ss:$8 sps:$4 sm:$0xff]  }
 0x112   :  { %1719 = vmatprep.subr.bf16.mxu1 %v3141_v50  ;;  %v3237_v50 = vld [vmem:[#allocation5 + $0x134] ss:$8 sps:$4 sm:$0xff]  }
 0x115   :  { %1720 = vmatpush1.bf16.msra.mxu1 %v3139_v52  ;;  %v3279_v52 = vld [vmem:[%s3576_s5 + $0x10] sm:$0xff]  }
 0x116   :  { %1721 = vmatprep.subr.bf16.mxu1 %v3144_v53  ;;  %v3280_v53 = vld [vmem:[%s3576_s5 + $0x58] sm:$0xff]  }
 0x119   :  { %1722 = vmatpush1.bf16.msra.mxu1 %v3142_v54  ;;  %v3235_v54 = vld [vmem:[#allocation5 + $0x130] ss:$8 sps:$4 sm:$0xff]  }
 0x11a   :  { %1723 = vmatprep.subr.bf16.mxu1 %v3147_v55  ;;  %v3240_v55 = vld [vmem:[#allocation5 + $0x144] ss:$8 sps:$4 sm:$0xff]  }
 0x11d   :  { %1724 = vmatpush1.bf16.msra.mxu1 %v3145_v56  ;;  %v3281_v56 = vld [vmem:[%s3576_s5 + $0x18] sm:$0xff]  }
 0x11e   :  { %1725 = vmatprep.subr.bf16.mxu1 %v3150_v57  ;;  %v3282_v57 = vld [vmem:[%s3576_s5 + $0x60] sm:$0xff]  }
 0x121   :  { %1726 = vmatpush1.bf16.msra.mxu1 %v3148_v60  ;;  %v3283_v60 = vld [vmem:[%s3576_s5 + $0x20] sm:$0xff]  }
 0x122   :  { %1727 = vmatprep.subr.bf16.mxu1 %v3153_v61  ;;  %v3284_v61 = vld [vmem:[%s3576_s5 + $0x68] sm:$0xff]  }
 0x125   :  { %1728 = vmatpush1.bf16.msra.mxu1 %v3151_v0  ;;  %v3285_v0 = vld [vmem:[%s3576_s5 + $0x28] sm:$0xff]  }
 0x126   :  { %1738 = vmatprep.subr.bf16.mxu1 %v3156_v1  ;;  %v3244_v1 = vld [vmem:[#allocation5 + $0x160] ss:$8 sps:$4 sm:$0xff]  }
 0x128   :  { %1730 = vmatmul.mubr.bf16.vlgmr.msra.gmra.mrb[4].mxu1 %v3465_v13  ;;  %v3169_v13 = vld [vmem:[#allocation2 + $0x6a8] ss:$16 sps:$4 sm:$0xff]  }
 0x129   :  { %1739 = vmatpush1.bf16.msra.mxu1 %v3154_v3  ;;  %1770 = vmatprep.mubr.bf16.mxu1 %v3368_v22  ;;  %v3247_v3 = vld [vmem:[#allocation5 + $0x170] ss:$8 sps:$4 sm:$0xff]  }
 0x12a   :  { %1740 = vmatprep.subr.bf16.mxu1 %v3159_v4  ;;  %v3252_v4 = vld [vmem:[#allocation5 + $0x184] ss:$8 sps:$4 sm:$0xff]  }
 0x12d   :  { %1741 = vmatpush1.bf16.msra.mxu1 %v3157_v5  ;;  %v3250_v5 = vld [vmem:[#allocation5 + $0x180] ss:$8 sps:$4 sm:$0xff]  }
 0x12e   :  { %1742 = vmatprep.subr.bf16.mxu1 %v3162_v8  ;;  %v3255_v8 = vld [vmem:[#allocation5 + $0x194] ss:$8 sps:$4 sm:$0xff]  }
 0x131   :  { %1743 = vmatpush1.bf16.msra.mxu1 %v3160_v9  ;;  %v3253_v9 = vld [vmem:[#allocation5 + $0x190] ss:$8 sps:$4 sm:$0xff]  }
 0x132   :  { %1744 = vmatprep.subr.bf16.mxu1 %v3165_v10  ;;  %v3258_v10 = vld [vmem:[#allocation5 + $0x1a4] ss:$8 sps:$4 sm:$0xff]  }
 0x135   :  { %1745 = vmatpush1.bf16.msra.mxu1 %v3163_v11  ;;  %v3256_v11 = vld [vmem:[#allocation5 + $0x1a0] ss:$8 sps:$4 sm:$0xff]  }
 0x136   :  { %1746 = vmatprep.subr.bf16.mxu1 %v3168_v12  ;;  %v3261_v12 = vld [vmem:[#allocation5 + $0x1b4] ss:$8 sps:$4 sm:$0xff]  }
 0x139   :  { %1747 = vmatpush1.bf16.msra.mxu1 %v3166_v14  ;;  %v3259_v14 = vld [vmem:[#allocation5 + $0x1b0] ss:$8 sps:$4 sm:$0xff]  }
 0x13a   :  { %1748 = vmatprep.subr.bf16.mxu1 %v3171_v15  ;;  %v3264_v15 = vld [vmem:[#allocation5 + $0x1c4] ss:$8 sps:$4 sm:$0xff]  }
 0x13b   :  { %v1485_v17 = vpop.f32.mrb[0].mxu1 }
 0x13c   :  { %v1487_v22 = vpop.f32.mrb[1].mxu1  ;;  %v1486_v29 = vadd.f32 %v1485_v17, %v289_v28  ;;  %v3265_v17 = vld [vmem:[#allocation5 + $0x1d0] ss:$8 sps:$4 sm:$0xff]  }
 0x13d   :  { %v1489_v18 = vpop.f32.mrb[2].mxu1  ;;  %1749 = vmatpush1.bf16.msra.mxu1 %v3169_v13  ;;  %v3262_v13 = vld [vmem:[#allocation5 + $0x1c0] ss:$8 sps:$4 sm:$0xff]  }
 0x13e   :  { %v1490_v20 = vpop.f32.mrb[3].mxu1  ;;  %1750 = vmatprep.subr.bf16.mxu1 %v3174_v16  ;;  %v3267_v16 = vld [vmem:[#allocation5 + $0x1d4] ss:$8 sps:$4 sm:$0xff]   ;;  %v3268_v18 = vld [vmem:[#allocation5 + $0x1e0] ss:$8 sps:$4 sm:$0xff]  }
 0x13f   :  { %v3271_v20 = vld [vmem:[#allocation5 + $0x1f0] ss:$8 sps:$4 sm:$0xff]  }
 0x141   :  { %1751 = vmatpush1.bf16.msra.mxu1 %v3172_v19  ;;  %v3273_v19 = vld [vmem:[#allocation5 + $0x1f4] ss:$8 sps:$4 sm:$0xff]  }
 0x142   :  { %1752 = vmatprep.subr.bf16.mxu1 %v3177_v21  ;;  %v296_v21 = vsub.s32 2, %v3482_v6 }
 0x144   :  { %v297_v24 = vrot.slane %v3488_v26, %v296_v21 }
 0x145   :  { %1753 = vmatpush1.bf16.msra.mxu1 %v3175_v23  ;;  %v300_v23 = vsub.s32 3, %v3482_v6 }
 0x146   :  { %2773 = vmatprep.subr.bf16.mxu1 %v3274_v41 }
 0x147   :  { %v301_v28 = vrot.slane %v3488_v26, %v300_v23 }
 0x148   :  { %1771 = vmatmul.mubr.bf16.vlgmr.msra.gmra.mrb[4].mxu1 %v3474_v45  ;;  %v293_v45 = vrot.slane %v3488_v26, %v292_v27  ;;  %v3287_v26 = vld [vmem:[%s3576_s5 + $0x30] sm:$0xff]  }
 0x149   :  { %2774 = vmatpush3.bf16.msra.mxu1 %v3275_v42 }
 0x14a   :  { %v1488_v7 = vadd.f32 %v1487_v22, %v293_v45  ;;  %2775 = vmatprep.subr.bf16.mxu1 %v3276_v43  ;;  %v3270_v22 = vld [vmem:[#allocation5 + $0x1e4] ss:$8 sps:$4 sm:$0xff]  }
 0x14d   :  { %2776 = vmatpush3.bf16.msra.mxu1 %v3277_v47 }
 0x14e   :  { %2777 = vmatprep.subr.bf16.mxu1 %v3278_v48 }
 0x151   :  { %2778 = vmatpush3.bf16.msra.mxu1 %v3279_v52 }
 0x152   :  { %2779 = vmatprep.subr.bf16.mxu1 %v3280_v53 }
 0x155   :  { %2780 = vmatpush3.bf16.msra.mxu1 %v3281_v56 }
 0x156   :  { %2781 = vmatprep.subr.bf16.mxu1 %v3282_v57 }
 0x159   :  { %2782 = vmatpush3.bf16.msra.mxu1 %v3283_v60 }
 0x15a   :  { %2783 = vmatprep.subr.bf16.mxu1 %v3284_v61 }
 0x15d   :  { %2784 = vmatpush3.bf16.msra.mxu1 %v3285_v0 }
 0x19c   :  { %v1608_v30 = vpop.f32.mrb[0].mxu0 }
 0x19d   :  { %v2796_v51 = vadd.f32 %v1608_v30, %v1486_v29  ;;  %v1610_v34 = vpop.f32.mrb[1].mxu0 }
 0x19e   :  { %v2798_v31 = vadd.f32 %v1610_v34, %v1488_v7  ;;  %v1612_v32 = vpop.f32.mrb[2].mxu0 }
 0x19f   :  { %v1779_v33 = vmax.f32 %v2796_v51, 0.0  ;;  %v1613_v35 = vpop.f32.mrb[3].mxu0 }
 0x1a0   :  { %v1780_v36 = vmax.f32 %v2798_v31, 0.0 }
 0x1a1   :  { %v1783_v39 = vpack.c.bf16 %v1779_v33, %v1779_v33 }
 0x1a2   :  { %v1784_v37 = vpack.c.bf16 %v1780_v36, %v1780_v36  ;;  %v3286_v36 = vld [vmem:[%s3576_s5 + $0x70] sm:$0xff]  }
 0x1a3   :  { %2785 = vmatprep.subr.bf16.mxu1 %v3286_v36 }
 0x1a4   :  { %2215 = vmatprep.mubr.bf16.mxu0 %v1784_v37  ;;  %2786 = vmatpush3.bf16.msra.mxu1 %v3287_v26  ;;  %v3288_v37 = vld [vmem:[%s3576_s5 + $0x78] sm:$0xff]  }
 0x1a5   :  { %2216 = vmatmul.mubr.bf16.vlgmr.msra.gmra.mrb[4].mxu0 %v1783_v39  ;;  %2787 = vmatprep.subr.bf16.mxu1 %v3288_v37  ;;  %v1851_v39 = vld [vmem:[%s3575_s4] sm:$0x3] }
 0x1a6   :  { %2225 = vmatpush1.bf16.msra.mxu0 %v3226_v38  ;;  %v3289_v38 = vld [vmem:[%s3576_s5 + $0x38] sm:$0xff]   ;;  %v1860_v41 = vrot.slane %v1851_v39, %v292_v27 }
 0x1a7   :  { %2226 = vmatprep.subr.bf16.mxu0 %v3231_v40  ;;  %v1856_v40 = vrot.slane %v1851_v39, %v288_v25  ;;  %v2756_v25 = vld [vmem:[%s3577_s6] ss:$0 sm:$0xff] }
 0x1a8   :  { %2788 = vmatpush3.bf16.msra.mxu1 %v3289_v38 }
 0x1aa   :  { %2227 = vmatpush1.bf16.msra.mxu0 %v3229_v44 }
 0x1ab   :  { %2228 = vmatprep.subr.bf16.mxu0 %v3234_v46 }
 0x1ae   :  { %2229 = vmatpush1.bf16.msra.mxu0 %v3232_v49 }
 0x1af   :  { %2230 = vmatprep.subr.bf16.mxu0 %v3237_v50 }
 0x1b2   :  { %2231 = vmatpush1.bf16.msra.mxu0 %v3235_v54 }
 0x1b3   :  { %2232 = vmatprep.subr.bf16.mxu0 %v3240_v55 }
 0x1b6   :  { %2233 = vmatpush1.bf16.msra.mxu0 %v3238_v58 }
 0x1b7   :  { %2234 = vmatprep.subr.bf16.mxu0 %v3243_v59 }
 0x1ba   :  { %2235 = vmatpush1.bf16.msra.mxu0 %v3241_v62 }
 0x1bb   :  { %2236 = vmatprep.subr.bf16.mxu0 %v3246_v63 }
 0x1be   :  { %2237 = vmatpush1.bf16.msra.mxu0 %v3244_v1 }
 0x1bf   :  { %2238 = vmatprep.subr.bf16.mxu0 %v3249_v2 }
 0x1c2   :  { %2239 = vmatpush1.bf16.msra.mxu0 %v3247_v3 }
 0x1c3   :  { %2240 = vmatprep.subr.bf16.mxu0 %v3252_v4 }
 0x1c6   :  { %2241 = vmatpush1.bf16.msra.mxu0 %v3250_v5 }
 0x1c7   :  { %2242 = vmatprep.subr.bf16.mxu0 %v3255_v8 }
 0x1ca   :  { %2243 = vmatpush1.bf16.msra.mxu0 %v3253_v9 }
 0x1cb   :  { %2244 = vmatprep.subr.bf16.mxu0 %v3258_v10 }
 0x1ce   :  { %2245 = vmatpush1.bf16.msra.mxu0 %v3256_v11 }
 0x1cf   :  { %2246 = vmatprep.subr.bf16.mxu0 %v3261_v12 }
 0x1d2   :  { %2247 = vmatpush1.bf16.msra.mxu0 %v3259_v14 }
 0x1d3   :  { %2248 = vmatprep.subr.bf16.mxu0 %v3264_v15 }
 0x1d6   :  { %2249 = vmatpush1.bf16.msra.mxu0 %v3262_v13 }
 0x1d7   :  { %2250 = vmatprep.subr.bf16.mxu0 %v3267_v16 }
 0x1da   :  { %2251 = vmatpush1.bf16.msra.mxu0 %v3265_v17 }
 0x1db   :  { %2252 = vmatprep.subr.bf16.mxu0 %v3270_v22 }
 0x1de   :  { %2253 = vmatpush1.bf16.msra.mxu0 %v3268_v18 }
 0x1df   :  { %2254 = vmatprep.subr.bf16.mxu0 %v3273_v19 }
 0x1e2   :  { %2255 = vmatpush1.bf16.msra.mxu0 %v3271_v20 }
 0x21b   :  { %v1772_v45 = vpop.f32.mrb[4].mxu1 }
 0x21c   :  { %v2799_v29 = vadd.f32 %v1772_v45, %v297_v24  ;;  %v1774_v7 = vpop.f32.mrb[5].mxu1 }
 0x21d   :  { %v2800_v30 = vadd.f32 %v1774_v7, %v301_v28  ;;  %v1776_v51 = vpop.f32.mrb[6].mxu1 }
 0x21e   :  { %v1781_v34 = vmax.f32 %v2799_v29, 0.0  ;;  %v1777_v31 = vpop.f32.mrb[7].mxu1 }
 0x21f   :  { %v1782_v32 = vmax.f32 %v2800_v30, 0.0 }
 0x220   :  { %v1785_v35 = vpack.c.bf16 %v1781_v34, %v1781_v34 }
 0x221   :  { %v1786_v33 = vpack.c.bf16 %v1782_v32, %v1782_v32 }
 0x223   :  { %2256 = vmatprep.mubr.bf16.mxu0 %v1786_v33 }
 0x224   :  { %2257 = vmatmul.mubr.bf16.vlgmr.msra.gmra.mrb[4].mxu0 %v1785_v35 }
 0x2f7   :  { %v2258_v42 = vpop.f32.mrb[4].mxu0 }
 0x2f8   :  { %v2801_v43 = vadd.f32 %v2258_v42, %v1856_v40  ;;  %v2260_v44 = vpop.f32.mrb[5].mxu0 }
 0x2f9   :  { %v2802_v46 = vadd.f32 %v2260_v44, %v1860_v41  ;;  %v2262_v47 = vpop.f32.mrb[6].mxu0 }
 0x2fa   :  { %v2265_v48 = vmax.f32 %v2801_v43, 0.0  ;;  %v2263_v49 = vpop.f32.mrb[7].mxu0 }
 0x2fb   :  { %v2266_v50 = vmax.f32 %v2802_v46, 0.0 }
 0x2fc   :  { %v2267_v53 = vpack.c.bf16 %v2265_v48, %v2265_v48 }
 0x2fd   :  { %v2268_v52 = vpack.c.bf16 %v2266_v50, %v2266_v50 }
 0x2ff   :  { %2436 = vmatprep.mubr.bf16.mxu1 %v2268_v52 }
 0x300   :  { %2437 = vmatmul.mubr.bf16.vlgmr.msra.gmra.mrb[8].mxu1 %v2267_v53 }
 0x3d3   :  { %v2789_v54 = vpop.f32.mrb[8].mxu1 }
 0x3d4   :  { %v2790_v55 = vpop.f32.mrb[9].mxu1 }
 0x3d5   :  { %v2791_v6 = vadd.f32 %v2790_v55, %v2789_v54  ;;  %v2792_v27 = vpop.f32.mrb[10].mxu1 }
 0x3d6   :  { %v2793_v56 = vpop.f32.mrb[11].mxu1 }
 0x3d7   :  { %v2439_v57 = vadd.f32 %v2791_v6, %v2756_v25 }
 0x3d9   :  { %2444 = vst [vmem:[#allocation7] sm:$0xff] %v2439_v57 }
 0x3da   :  { %3345 = shalt.err (!%p3342_p6)
}
 0x3db   :  { %s3346_s6 = scalar_lea.hbm %s3578_s7, 128 }
 0x3dc   :  { %p3347_p7 = scmp.ne.s32.totalorder %s3578_s7, %s3346_s6  ;;  %p3350_p8 = scmp.lt.u32.totalorder %s3346_s6, %s3578_s7 }
 0x3de   :  { %p3352_p9 = pnand %p3350_p8, %p3347_p7 }
 0x3e0   :  { %3355 = shalt.err (!%p3352_p9)
}
 0x3e1   :  { %2454 = dma.vmem_to_hbm [thread:$0]  %s2452_s20, 128, %s3578_s7, [#allocation4]  }
 0x3e2   :  { %3360 = dma.done.wait [#allocation4], 128  }
 0x3e3   :  { %3361 = vsyncadd [#allocation4], 4294967168 }
 0x3e4   :  { %2458 = vsyncpa [#allocation3], 1 }
 0x3e5   :  { %2459 = vsyncpa [#allocation6], 1 }
 0x3e6   :  { %2460 = vsyncpa [#allocation4], 1 }

</bundles_post_ra>
